<compile_context>
chip_gen: v7x
topology: tpu7x:2x2x1
jax: 0.10.0
libtpu: 0.0.40
codegen_flags: <defaults>
</compile_context>

<pallas_src>
from functools import partial

import jax
import jax.numpy as jnp
from jax import lax
from jax.experimental import pallas as pl
from jax.experimental.pallas import tpu as pltpu

EPS = 1e-5  # BatchNorm2d default eps


def _pick_row_tile(H, W, Cin, C4, budget):
    """Largest row tile TH dividing H whose per-step working set fits the VMEM budget."""
    Wp = W + 1

    def fits(t):
        in_b = (t + 1) * Wp * Cin * 2                        # bf16 input window
        out_b = t * W * C4 * 4                               # f32 output tile (pass 2)
        tmp_b = 4 * t * W * Cin * 2 + 2 * t * W * C4 * 4     # shifted LHS copies + y + slack
        return 2 * (in_b + out_b) + tmp_b <= budget

    upper = max(1, min(H // 2, 256))                         # prefer >=2 grid steps
    for t in range(upper, 0, -1):
        if H % t == 0 and fits(t):
            return t
    return 1


def _packed_conv(x_win, w_ref, wide):
    """x_win: (TH+1, W+1, Cin) bf16 padded-input window (last row/col = halo / zero pad).
    Returns the un-normalized packed polyphase ConvTranspose output (TH*W, 4*Cout) f32,
    columns ordered [ee | eo | oe | oo] (even/odd output row x even/odd output column)."""
    TH1, Wp, Cin = x_win.shape
    TH, W = TH1 - 1, Wp - 1
    M = TH * W
    # TODO(synk): the +1-column slices below are sublane-misaligned (width W+1); a width
    # pad to a sublane multiple + pltpu.roll would avoid the resulting relayout copies --
    # left as plain slices pending a bundle-dump check.
    x00 = x_win[:TH, :W, :].reshape(M, Cin)      # x[p,   q  ]
    x01 = x_win[:TH, 1:, :].reshape(M, Cin)      # x[p,   q+1]
    x10 = x_win[1:, :W, :].reshape(M, Cin)       # x[p+1, q  ]
    x11 = x_win[1:, 1:, :].reshape(M, Cin)       # x[p+1, q+1]
    dot = lambda a, b: jnp.dot(a, b, preferred_element_type=jnp.float32)

    if wide:
        # fused zero-padded taps (4, Cin, 4*Cout): best MXU fill when 4*Cout < 128
        return (dot(x00, w_ref[0]) + dot(x01, w_ref[1])
                + dot(x10, w_ref[2]) + dot(x11, w_ref[3]))

    # exact per-phase taps (9, Cin, Cout): 9/16 of the fused MXU FLOPs, no zero blocks
    y_ee = dot(x00, w_ref[0])
    y_eo = dot(x00, w_ref[1]) + dot(x01, w_ref[2])
    y_oe = dot(x00, w_ref[3]) + dot(x10, w_ref[4])
    y_oo = (dot(x00, w_ref[5]) + dot(x01, w_ref[6])
            + dot(x10, w_ref[7]) + dot(x11, w_ref[8]))
    return jnp.concatenate([y_ee, y_eo, y_oe, y_oo], axis=-1)


def _stats_kernel(wide, xw_ref, w_ref, s1_ref, s2_ref):
    # xw_ref: (1, 1, TH+1, W+1, Cin) bf16 ; w_ref: packed taps
    # s1/s2 : (1, 1, 1, 4*Cout) f32 BN partial sums, accumulated over the gi (row) axis
    gi = pl.program_id(2)
    y = _packed_conv(xw_ref[0, 0], w_ref, wide)              # (TH*W, 4*Cout) f32

    @pl.when(gi == 0)
    def _init():
        s1_ref[...] = jnp.zeros_like(s1_ref)
        s2_ref[...] = jnp.zeros_like(s2_ref)

    s1_ref[...] += y.sum(axis=0).reshape(s1_ref.shape)
    s2_ref[...] += (y * y).sum(axis=0).reshape(s2_ref.shape)


def _out_kernel(wide, xw_ref, w_ref, sc_ref, sh_ref, o_ref):
    # Recompute the polyphase conv (no HBM intermediate), apply BN scale/shift, and write
    # the packed output (1, TH, 2, W, 2*Cout) which reshapes for free to NHWC.
    _, TH, _, W, C2 = o_ref.shape
    y = _packed_conv(xw_ref[0, 0], w_ref, wide).reshape(TH, W, 2 * C2)
    sc = sc_ref[...]                                          # (1, 4*Cout)
    sh = sh_ref[...]
    # even output rows (dy=0): packed cols [0:2C] = [ee|eo]; odd rows: [2C:4C] = [oe|oo]
    o_ref[0, :, 0, :, :] = y[:, :, :C2] * sc[:, :C2] + sh[:, :C2]
    o_ref[0, :, 1, :, :] = y[:, :, C2:] * sc[:, C2:] + sh[:, C2:]


def up_forward(x_nchw, w_t, gamma, beta):
    """x_nchw: (N, Cin, H, W) f32; w_t: PyTorch ConvTranspose2d weight (Cin, Cout, 3, 3);
    gamma/beta: (Cout,). Returns (N, Cout, 2H, 2W) f32."""
    N, Cin, H, W = x_nchw.shape
    Cout = w_t.shape[1]
    C4, C2, Wp = 4 * Cout, 2 * Cout, W + 1

    # ---- generation-aware VMEM budget (v7x: 64 MiB/TC; v5e/v6e: 128 MiB) ----
    try:
        vmem_cap = int(getattr(pltpu.get_tpu_info(), "vmem_capacity_bytes", 128 << 20))
    except Exception:  # CPU tracing / older runtimes
        vmem_cap = 128 << 20
    vmem_limit = max(min(int(vmem_cap * 0.70), 100 << 20), 32 << 20)

    wide = C4 < 128                      # zero-padded fused taps only for narrow layers
    w_bytes = (4 * Cin * C4 if wide else 9 * Cin * Cout) * 2
    budget = max(vmem_limit - 2 * w_bytes - (4 << 20), 4 << 20)
    TH = _pick_row_tile(H, W, Cin, C4, budget)
    GH = H // TH
    GO = 2 if GH % 2 == 0 else 1         # row-tile groups: feeds the 2nd v7x TC at small N
    GI = GH // GO

    # ---- glue: NHWC + bottom/right zero pad + bf16 + overlapping (TH+1)-row windows ----
    # TODO(synk): in a full NHWC FBPConvNet these boundary layout changes disappear.
    x = jnp.transpose(x_nchw, (0, 2, 3, 1)).astype(jnp.bfloat16)
    xp = jnp.pad(x, ((0, 0), (0, 1), (0, 1), (0, 0)))          # (N, H+1, W+1, Cin)
    row_idx = jnp.arange(GH)[:, None] * TH + jnp.arange(TH + 1)[None, :]
    xw = xp[:, row_idx]                                        # (N, GH, TH+1, W+1, Cin)

    # ---- packed taps;  ee = x00 W11, eo = x00 W12 + x01 W10,
    #                    oe = x00 W21 + x10 W01, oo = x00 W22 + x01 W20 + x10 W02 + x11 W00
    taps = jnp.transpose(w_t.astype(jnp.float32), (2, 3, 0, 1))  # (3, 3, Cin, Cout)
    if wide:
        Z = jnp.zeros((Cin, Cout), jnp.float32)
        w_r = jnp.stack([
            jnp.concatenate([taps[1, 1], taps[1, 2], taps[2, 1], taps[2, 2]], axis=1),
            jnp.concatenate([Z,          taps[1, 0], Z,          taps[2, 0]], axis=1),
            jnp.concatenate([Z,          Z,          taps[0, 1], taps[0, 2]], axis=1),
            jnp.concatenate([Z,          Z,          Z,          taps[0, 0]], axis=1),
        ], axis=0).astype(jnp.bfloat16)                        # (4, Cin, 4*Cout)
    else:
        w_r = jnp.stack([taps[1, 1],                            # ee: x00
                         taps[1, 2], taps[1, 0],                # eo: x00, x01
                         taps[2, 1], taps[0, 1],                # oe: x00, x10
                         taps[2, 2], taps[2, 0], taps[0, 2], taps[0, 0]],  # oo
                        axis=0).astype(jnp.bfloat16)           # (9, Cin, Cout)
    w_shape = w_r.shape
    # TODO(synk): on very large layers, single-buffer the constant-index weight block
    # (pipeline_mode=pl.Buffered(1)) to save one resident weight copy of VMEM.

    def xw_map_p1(n, go, gi):
        return (n, go * GI + gi, 0, 0, 0)

    mm_flops = 2 * (16 if wide else 9) * Cin * Cout * N * H * W
    io_bytes = int(xw.size) * 2 + int(w_r.size) * 2

    # ---- pass 1: polyphase transposed conv -> BatchNorm partial sums only ----
    s1, s2 = pl.pallas_call(
        partial(_stats_kernel, wide),
        grid=(N, GO, GI),
        in_specs=[
            pl.BlockSpec((1, 1, TH + 1, Wp, Cin), xw_map_p1),
            pl.BlockSpec(w_shape, lambda n, go, gi: (0, 0, 0)),
        ],
        out_specs=[
            pl.BlockSpec((1, 1, 1, C4), lambda n, go, gi: (n, go, 0, 0)),
            pl.BlockSpec((1, 1, 1, C4), lambda n, go, gi: (n, go, 0, 0)),
        ],
        out_shape=[
            jax.ShapeDtypeStruct((N, GO, 1, C4), jnp.float32),
            jax.ShapeDtypeStruct((N, GO, 1, C4), jnp.float32),
        ],
        compiler_params=pltpu.CompilerParams(
            dimension_semantics=("parallel", "parallel", "arbitrary"),
            vmem_limit_bytes=vmem_limit),
        cost_estimate=pl.CostEstimate(flops=mm_flops, transcendentals=0,
                                      bytes_accessed=io_bytes + 2 * N * GO * C4 * 4),
    )(xw, w_r)

    # ---- BatchNorm finalize (tiny, per-channel) ----
    # TODO(synk): single-pass E[y^2]-E[y]^2 in f32 can cancel for very large N*H*W; a
    # per-tile-centered (Welford-style) combine would be more robust.  Clamped >= 0 here.
    cnt = jnp.float32(4 * N * H * W)                   # output pixels per channel
    s1c = s1.sum(axis=(0, 1, 2)).reshape(4, Cout).sum(axis=0)
    s2c = s2.sum(axis=(0, 1, 2)).reshape(4, Cout).sum(axis=0)
    mean = s1c / cnt
    var = jnp.maximum(s2c / cnt - mean * mean, 0.0)
    scale = gamma.astype(jnp.float32) * lax.rsqrt(var + EPS)
    shift = beta.astype(jnp.float32) - mean * scale
    sc_pk = jnp.tile(scale, 4).reshape(1, C4)          # packed per-(phase, channel)
    sh_pk = jnp.tile(shift, 4).reshape(1, C4)

    # ---- pass 2: recompute conv, normalize, write final packed output ----
    # No intermediate tensor crosses HBM; the conv matmuls are recomputed instead.
    # TODO(synk): for MXU-bound layers (Cin >= ~1024) a bf16 intermediate written by
    # pass 1 would beat recomputation; this path targets the HBM-bound regime.
    out5 = pl.pallas_call(
        partial(_out_kernel, wide),
        grid=(N, GH),
        in_specs=[
            pl.BlockSpec((1, 1, TH + 1, Wp, Cin), lambda n, i: (n, i, 0, 0, 0)),
            pl.BlockSpec(w_shape, lambda n, i: (0, 0, 0)),
            pl.BlockSpec((1, C4), lambda n, i: (0, 0)),
            pl.BlockSpec((1, C4), lambda n, i: (0, 0)),
        ],
        out_specs=pl.BlockSpec((1, TH, 2, W, C2), lambda n, i: (n, i, 0, 0, 0)),
        out_shape=jax.ShapeDtypeStruct((N, H, 2, W, C2), jnp.float32),
        compiler_params=pltpu.CompilerParams(
            dimension_semantics=("parallel", "parallel"),
            vmem_limit_bytes=vmem_limit),
        cost_estimate=pl.CostEstimate(flops=mm_flops + 2 * N * H * W * C4,
                                      transcendentals=0,
                                      bytes_accessed=io_bytes + N * H * W * C4 * 4),
    )(xw, w_r, sc_pk, sh_pk)

    # (N, H, 2, W, 2*Cout) reshapes with no data movement to NHWC (N, 2H, 2W, Cout).
    out_nhwc = out5.reshape(N, 2 * H, 2 * W, Cout)
    # TODO(synk): final NCHW transpose is forced by the PyTorch NCHW module boundary.
    return jnp.transpose(out_nhwc, (0, 3, 1, 2))


def ref_forward(x_nchw, w_t, gamma, beta):
    """Pure-JAX reference: transposed conv via lhs-dilated conv + BatchNorm (train mode)."""
    w_conv = jnp.transpose(w_t, (1, 0, 2, 3))[:, :, ::-1, ::-1]   # (Cout, Cin, 3, 3), flipped
    y = lax.conv_general_dilated(
        x_nchw, w_conv, window_strides=(1, 1),
        padding=((1, 2), (1, 2)), lhs_dilation=(2, 2),
        dimension_numbers=('NCHW', 'OIHW', 'NCHW'),
        precision=lax.Precision.HIGHEST)
    mean = y.mean(axis=(0, 2, 3), keepdims=True)
    var = ((y - mean) ** 2).mean(axis=(0, 2, 3), keepdims=True)
    return ((y - mean) * lax.rsqrt(var + EPS) * gamma.reshape(1, -1, 1, 1)
            + beta.reshape(1, -1, 1, 1))


if __name__ == "__main__":
    key = jax.random.PRNGKey(0)
    k_x, k_w, k_g, k_b = jax.random.split(key, 4)
    N, Cin, Cout, H, W = 2, 8, 4, 16, 16          # Up(channels=(8, 4))

    x = jax.random.normal(k_x, (N, Cin, H, W), jnp.float32)
    bound = 1.0 / (Cin * 9) ** 0.5                # ConvTranspose2d default init range
    w_t = jax.random.uniform(k_w, (Cin, Cout, 3, 3), jnp.float32, -bound, bound)
    gamma = 1.0 + 0.1 * jax.random.normal(k_g, (Cout,), jnp.float32)
    beta = 0.1 * jax.random.normal(k_b, (Cout,), jnp.float32)

    out = jax.jit(up_forward)(x, w_t, gamma, beta)
    jax.block_until_ready(out)
    assert out.shape == (N, Cout, 2 * H, 2 * W), out.shape

    # algorithmic check: reference fed the same bf16-rounded operands the kernel uses
    x_bf = x.astype(jnp.bfloat16).astype(jnp.float32)
    w_bf = w_t.astype(jnp.bfloat16).astype(jnp.float32)
    ref = ref_forward(x_bf, w_bf, gamma, beta)
    err = float(jnp.max(jnp.abs(out - ref)))
    assert err < 2e-3, f"max abs err vs bf16-input reference: {err}"

    # sanity vs full-f32 reference (difference is only the intentional bf16 matmul inputs)
    err_f32 = float(jnp.max(jnp.abs(out - ref_forward(x, w_t, gamma, beta))))
    assert err_f32 < 1e-1, f"max abs err vs f32 reference: {err_f32}"

    print("KERNEL_OK")
</pallas_src>

<mosaic_0001>
module attributes {stable_mosaic.version = 11 : i64} {
  func.func @_stats_kernel(%arg0: i32, %arg1: i32, %arg2: i32, %arg3: memref<1x1x9x17x8xbf16, #tpu.memory_space<vmem>>, %arg4: memref<4x8x16xbf16, #tpu.memory_space<vmem>>, %arg5: memref<1x1x1x16xf32, #tpu.memory_space<vmem>>, %arg6: memref<1x1x1x16xf32, #tpu.memory_space<vmem>>) attributes {dimension_semantics = [#tpu.dimension_semantics<parallel>, #tpu.dimension_semantics<parallel>, #tpu.dimension_semantics<arbitrary>], iteration_bounds = array<i64: 2, 2, 1>, scalar_prefetch = 0 : i64, scratch_operands = 0 : i64, tpu.core_type = #tpu.core_type<tc>, window_params = [{transform_indices = @transform_0, window_bounds = array<i64: 1, 1, 9, 17, 8>}, {pipeline_mode = #tpu.pipeline_mode<synchronous>, transform_indices = @transform_1, window_bounds = array<i64: 4, 8, 16>}, {transform_indices = @transform_2, window_bounds = array<i64: 1, 1, 1, 16>}, {transform_indices = @transform_3, window_bounds = array<i64: 1, 1, 1, 16>}]} {
    %c0 = arith.constant 0 : index
    %c0_0 = arith.constant 0 : index
    %c0_1 = arith.constant 0 : index
    %c0_2 = arith.constant 0 : index
    %c0_3 = arith.constant 0 : index
    %0 = vector.load %arg3[%c0, %c0_0, %c0_1, %c0_2, %c0_3] : memref<1x1x9x17x8xbf16, #tpu.memory_space<vmem>>, vector<1x1x9x17x8xbf16>
    %1 = vector.shape_cast %0 : vector<1x1x9x17x8xbf16> to vector<9x17x8xbf16>
    %2 = vector.extract_strided_slice %1 {offsets = [0, 0, 0], sizes = [8, 16, 8], strides = [1, 1, 1]} : vector<9x17x8xbf16> to vector<8x16x8xbf16>
    %3 = vector.shape_cast %2 : vector<8x16x8xbf16> to vector<128x8xbf16>
    %4 = vector.extract_strided_slice %1 {offsets = [0, 1, 0], sizes = [8, 16, 8], strides = [1, 1, 1]} : vector<9x17x8xbf16> to vector<8x16x8xbf16>
    %5 = vector.shape_cast %4 : vector<8x16x8xbf16> to vector<128x8xbf16>
    %6 = vector.extract_strided_slice %1 {offsets = [1, 0, 0], sizes = [8, 16, 8], strides = [1, 1, 1]} : vector<9x17x8xbf16> to vector<8x16x8xbf16>
    %7 = vector.shape_cast %6 : vector<8x16x8xbf16> to vector<128x8xbf16>
    %8 = vector.extract_strided_slice %1 {offsets = [1, 1, 0], sizes = [8, 16, 8], strides = [1, 1, 1]} : vector<9x17x8xbf16> to vector<8x16x8xbf16>
    %9 = vector.shape_cast %8 : vector<8x16x8xbf16> to vector<128x8xbf16>
    %c0_4 = arith.constant 0 : index
    %c0_5 = arith.constant 0 : index
    %c0_6 = arith.constant 0 : index
    %10 = vector.load %arg4[%c0_4, %c0_5, %c0_6] : memref<4x8x16xbf16, #tpu.memory_space<vmem>>, vector<1x8x16xbf16>
    %11 = vector.shape_cast %10 : vector<1x8x16xbf16> to vector<8x16xbf16>
    %cst = arith.constant dense<0.000000e+00> : vector<128x16xf32>
    %12 = tpu.matmul %3, %11, %cst {dimension_numbers = #tpu.dot_dimension_numbers<[1], [0], [0], [1], [0, 0, 1, 1], [], []>} : vector<128x8xbf16>, vector<8x16xbf16>, vector<128x16xf32> -> vector<128x16xf32>
    %c1 = arith.constant 1 : index
    %c0_7 = arith.constant 0 : index
    %c0_8 = arith.constant 0 : index
    %13 = vector.load %arg4[%c1, %c0_7, %c0_8] : memref<4x8x16xbf16, #tpu.memory_space<vmem>>, vector<1x8x16xbf16>
    %14 = vector.shape_cast %13 : vector<1x8x16xbf16> to vector<8x16xbf16>
    %cst_9 = arith.constant dense<0.000000e+00> : vector<128x16xf32>
    %15 = tpu.matmul %5, %14, %cst_9 {dimension_numbers = #tpu.dot_dimension_numbers<[1], [0], [0], [1], [0, 0, 1, 1], [], []>} : vector<128x8xbf16>, vector<8x16xbf16>, vector<128x16xf32> -> vector<128x16xf32>
    %16 = arith.addf %12, %15 : vector<128x16xf32>
    %c2 = arith.constant 2 : index
    %c0_10 = arith.constant 0 : index
    %c0_11 = arith.constant 0 : index
    %17 = vector.load %arg4[%c2, %c0_10, %c0_11] : memref<4x8x16xbf16, #tpu.memory_space<vmem>>, vector<1x8x16xbf16>
    %18 = vector.shape_cast %17 : vector<1x8x16xbf16> to vector<8x16xbf16>
    %cst_12 = arith.constant dense<0.000000e+00> : vector<128x16xf32>
    %19 = tpu.matmul %7, %18, %cst_12 {dimension_numbers = #tpu.dot_dimension_numbers<[1], [0], [0], [1], [0, 0, 1, 1], [], []>} : vector<128x8xbf16>, vector<8x16xbf16>, vector<128x16xf32> -> vector<128x16xf32>
    %20 = arith.addf %16, %19 : vector<128x16xf32>
    %c3 = arith.constant 3 : index
    %c0_13 = arith.constant 0 : index
    %c0_14 = arith.constant 0 : index
    %21 = vector.load %arg4[%c3, %c0_13, %c0_14] : memref<4x8x16xbf16, #tpu.memory_space<vmem>>, vector<1x8x16xbf16>
    %22 = vector.shape_cast %21 : vector<1x8x16xbf16> to vector<8x16xbf16>
    %cst_15 = arith.constant dense<0.000000e+00> : vector<128x16xf32>
    %23 = tpu.matmul %9, %22, %cst_15 {dimension_numbers = #tpu.dot_dimension_numbers<[1], [0], [0], [1], [0, 0, 1, 1], [], []>} : vector<128x8xbf16>, vector<8x16xbf16>, vector<128x16xf32> -> vector<128x16xf32>
    %24 = arith.addf %20, %23 : vector<128x16xf32>
    %c0_i32 = arith.constant 0 : i32
    %25 = arith.cmpi eq, %arg2, %c0_i32 : i32
    %26 = arith.extui %25 : i1 to i32
    %c0_i32_16 = arith.constant 0 : i32
    %27 = arith.cmpi ne, %26, %c0_i32_16 : i32
    scf.if %27 {
      %cst_35 = arith.constant 0.000000e+00 : f32
      %39 = vector.broadcast %cst_35 : f32 to vector<1x1x1x16xf32>
      %c0_36 = arith.constant 0 : index
      %c0_37 = arith.constant 0 : index
      %c0_38 = arith.constant 0 : index
      %c0_39 = arith.constant 0 : index
      %40 = vector.load %arg5[%c0_36, %c0_37, %c0_38, %c0_39] : memref<1x1x1x16xf32, #tpu.memory_space<vmem>>, vector<1x1x1x16xf32>
      tpu.vector_store %arg5[%c0_36, %c0_37, %c0_38, %c0_39], %39 {strides = array<i32>} : memref<1x1x1x16xf32, #tpu.memory_space<vmem>>, vector<1x1x1x16xf32>,
      %cst_40 = arith.constant 0.000000e+00 : f32
      %41 = vector.broadcast %cst_40 : f32 to vector<1x1x1x16xf32>
      %c0_41 = arith.constant 0 : index
      %c0_42 = arith.constant 0 : index
      %c0_43 = arith.constant 0 : index
      %c0_44 = arith.constant 0 : index
      %42 = vector.load %arg6[%c0_41, %c0_42, %c0_43, %c0_44] : memref<1x1x1x16xf32, #tpu.memory_space<vmem>>, vector<1x1x1x16xf32>
      tpu.vector_store %arg6[%c0_41, %c0_42, %c0_43, %c0_44], %41 {strides = array<i32>} : memref<1x1x1x16xf32, #tpu.memory_space<vmem>>, vector<1x1x1x16xf32>,
    } else {
    }
    %c0_17 = arith.constant 0 : index
    %c0_18 = arith.constant 0 : index
    %c0_19 = arith.constant 0 : index
    %c0_20 = arith.constant 0 : index
    %28 = vector.load %arg5[%c0_17, %c0_18, %c0_19, %c0_20] : memref<1x1x1x16xf32, #tpu.memory_space<vmem>>, vector<1x1x1x16xf32>
    %cst_21 = arith.constant dense<0.000000e+00> : vector<16xf32>
    %29 = vector.multi_reduction <add>, %24, %cst_21 [0] : vector<128x16xf32> to vector<16xf32>
    %30 = vector.shape_cast %29 : vector<16xf32> to vector<1x1x1x16xf32>
    %31 = arith.addf %28, %30 : vector<1x1x1x16xf32>
    %c0_22 = arith.constant 0 : index
    %c0_23 = arith.constant 0 : index
    %c0_24 = arith.constant 0 : index
    %c0_25 = arith.constant 0 : index
    %32 = vector.load %arg5[%c0_22, %c0_23, %c0_24, %c0_25] : memref<1x1x1x16xf32, #tpu.memory_space<vmem>>, vector<1x1x1x16xf32>
    tpu.vector_store %arg5[%c0_22, %c0_23, %c0_24, %c0_25], %31 {strides = array<i32>} : memref<1x1x1x16xf32, #tpu.memory_space<vmem>>, vector<1x1x1x16xf32>,
    %c0_26 = arith.constant 0 : index
    %c0_27 = arith.constant 0 : index
    %c0_28 = arith.constant 0 : index
    %c0_29 = arith.constant 0 : index
    %33 = vector.load %arg6[%c0_26, %c0_27, %c0_28, %c0_29] : memref<1x1x1x16xf32, #tpu.memory_space<vmem>>, vector<1x1x1x16xf32>
    %34 = arith.mulf %24, %24 : vector<128x16xf32>
    %cst_30 = arith.constant dense<0.000000e+00> : vector<16xf32>
    %35 = vector.multi_reduction <add>, %34, %cst_30 [0] : vector<128x16xf32> to vector<16xf32>
    %36 = vector.shape_cast %35 : vector<16xf32> to vector<1x1x1x16xf32>
    %37 = arith.addf %33, %36 : vector<1x1x1x16xf32>
    %c0_31 = arith.constant 0 : index
    %c0_32 = arith.constant 0 : index
    %c0_33 = arith.constant 0 : index
    %c0_34 = arith.constant 0 : index
    %38 = vector.load %arg6[%c0_31, %c0_32, %c0_33, %c0_34] : memref<1x1x1x16xf32, #tpu.memory_space<vmem>>, vector<1x1x1x16xf32>
    tpu.vector_store %arg6[%c0_31, %c0_32, %c0_33, %c0_34], %37 {strides = array<i32>} : memref<1x1x1x16xf32, #tpu.memory_space<vmem>>, vector<1x1x1x16xf32>,
    return
  }
  func.func @transform_0(%arg0: i32, %arg1: i32, %arg2: i32) -> (i32, i32, i32, i32, i32) {
    %c1_i32 = arith.constant 1 : i32
    %0 = arith.muli %arg1, %c1_i32 : i32
    %1 = arith.addi %0, %arg2 : i32
    %c0_i32 = arith.constant 0 : i32
    %c0_i32_0 = arith.constant 0 : i32
    %c0_i32_1 = arith.constant 0 : i32
    %c0_i32_2 = arith.constant 0 : i32
    return %arg0, %1, %c0_i32, %c0_i32_0, %c0_i32_1 : i32, i32, i32, i32, i32
  }
  func.func @transform_1(%arg0: i32, %arg1: i32, %arg2: i32) -> (i32, i32, i32) {
    %c0_i32 = arith.constant 0 : i32
    %c0_i32_0 = arith.constant 0 : i32
    %c0_i32_1 = arith.constant 0 : i32
    %c0_i32_2 = arith.constant 0 : i32
    return %c0_i32, %c0_i32_0, %c0_i32_1 : i32, i32, i32
  }
  func.func @transform_2(%arg0: i32, %arg1: i32, %arg2: i32) -> (i32, i32, i32, i32) {
    %c0_i32 = arith.constant 0 : i32
    %c0_i32_0 = arith.constant 0 : i32
    %c0_i32_1 = arith.constant 0 : i32
    return %arg0, %arg1, %c0_i32, %c0_i32_0 : i32, i32, i32, i32
  }
  func.func @transform_3(%arg0: i32, %arg1: i32, %arg2: i32) -> (i32, i32, i32, i32) {
    %c0_i32 = arith.constant 0 : i32
    %c0_i32_0 = arith.constant 0 : i32
    %c0_i32_1 = arith.constant 0 : i32
    return %arg0, %arg1, %c0_i32, %c0_i32_0 : i32, i32, i32, i32
  }
}

module attributes {stable_mosaic.version = 11 : i64} {
  func.func @_out_kernel(%arg0: i32, %arg1: i32, %arg2: memref<1x1x9x17x8xbf16, #tpu.memory_space<vmem>>, %arg3: memref<4x8x16xbf16, #tpu.memory_space<vmem>>, %arg4: memref<1x16xf32, #tpu.memory_space<vmem>>, %arg5: memref<1x16xf32, #tpu.memory_space<vmem>>, %arg6: memref<1x8x2x16x8xf32, #tpu.memory_space<vmem>>) attributes {dimension_semantics = [#tpu.dimension_semantics<parallel>, #tpu.dimension_semantics<parallel>], iteration_bounds = array<i64: 2, 2>, scalar_prefetch = 0 : i64, scratch_operands = 0 : i64, tpu.core_type = #tpu.core_type<tc>, window_params = [{transform_indices = @transform_0, window_bounds = array<i64: 1, 1, 9, 17, 8>}, {pipeline_mode = #tpu.pipeline_mode<synchronous>, transform_indices = @transform_1, window_bounds = array<i64: 4, 8, 16>}, {pipeline_mode = #tpu.pipeline_mode<synchronous>, transform_indices = @transform_2, window_bounds = array<i64: 1, 16>}, {pipeline_mode = #tpu.pipeline_mode<synchronous>, transform_indices = @transform_3, window_bounds = array<i64: 1, 16>}, {transform_indices = @transform_4, window_bounds = array<i64: 1, 8, 2, 16, 8>}]} {
    %c0 = arith.constant 0 : index
    %c0_0 = arith.constant 0 : index
    %c0_1 = arith.constant 0 : index
    %c0_2 = arith.constant 0 : index
    %c0_3 = arith.constant 0 : index
    %0 = vector.load %arg2[%c0, %c0_0, %c0_1, %c0_2, %c0_3] : memref<1x1x9x17x8xbf16, #tpu.memory_space<vmem>>, vector<1x1x9x17x8xbf16>
    %1 = vector.shape_cast %0 : vector<1x1x9x17x8xbf16> to vector<9x17x8xbf16>
    %2 = vector.extract_strided_slice %1 {offsets = [0, 0, 0], sizes = [8, 16, 8], strides = [1, 1, 1]} : vector<9x17x8xbf16> to vector<8x16x8xbf16>
    %3 = vector.shape_cast %2 : vector<8x16x8xbf16> to vector<128x8xbf16>
    %4 = vector.extract_strided_slice %1 {offsets = [0, 1, 0], sizes = [8, 16, 8], strides = [1, 1, 1]} : vector<9x17x8xbf16> to vector<8x16x8xbf16>
    %5 = vector.shape_cast %4 : vector<8x16x8xbf16> to vector<128x8xbf16>
    %6 = vector.extract_strided_slice %1 {offsets = [1, 0, 0], sizes = [8, 16, 8], strides = [1, 1, 1]} : vector<9x17x8xbf16> to vector<8x16x8xbf16>
    %7 = vector.shape_cast %6 : vector<8x16x8xbf16> to vector<128x8xbf16>
    %8 = vector.extract_strided_slice %1 {offsets = [1, 1, 0], sizes = [8, 16, 8], strides = [1, 1, 1]} : vector<9x17x8xbf16> to vector<8x16x8xbf16>
    %9 = vector.shape_cast %8 : vector<8x16x8xbf16> to vector<128x8xbf16>
    %c0_4 = arith.constant 0 : index
    %c0_5 = arith.constant 0 : index
    %c0_6 = arith.constant 0 : index
    %10 = vector.load %arg3[%c0_4, %c0_5, %c0_6] : memref<4x8x16xbf16, #tpu.memory_space<vmem>>, vector<1x8x16xbf16>
    %11 = vector.shape_cast %10 : vector<1x8x16xbf16> to vector<8x16xbf16>
    %cst = arith.constant dense<0.000000e+00> : vector<128x16xf32>
    %12 = tpu.matmul %3, %11, %cst {dimension_numbers = #tpu.dot_dimension_numbers<[1], [0], [0], [1], [0, 0, 1, 1], [], []>} : vector<128x8xbf16>, vector<8x16xbf16>, vector<128x16xf32> -> vector<128x16xf32>
    %c1 = arith.constant 1 : index
    %c0_7 = arith.constant 0 : index
    %c0_8 = arith.constant 0 : index
    %13 = vector.load %arg3[%c1, %c0_7, %c0_8] : memref<4x8x16xbf16, #tpu.memory_space<vmem>>, vector<1x8x16xbf16>
    %14 = vector.shape_cast %13 : vector<1x8x16xbf16> to vector<8x16xbf16>
    %cst_9 = arith.constant dense<0.000000e+00> : vector<128x16xf32>
    %15 = tpu.matmul %5, %14, %cst_9 {dimension_numbers = #tpu.dot_dimension_numbers<[1], [0], [0], [1], [0, 0, 1, 1], [], []>} : vector<128x8xbf16>, vector<8x16xbf16>, vector<128x16xf32> -> vector<128x16xf32>
    %16 = arith.addf %12, %15 : vector<128x16xf32>
    %c2 = arith.constant 2 : index
    %c0_10 = arith.constant 0 : index
    %c0_11 = arith.constant 0 : index
    %17 = vector.load %arg3[%c2, %c0_10, %c0_11] : memref<4x8x16xbf16, #tpu.memory_space<vmem>>, vector<1x8x16xbf16>
    %18 = vector.shape_cast %17 : vector<1x8x16xbf16> to vector<8x16xbf16>
    %cst_12 = arith.constant dense<0.000000e+00> : vector<128x16xf32>
    %19 = tpu.matmul %7, %18, %cst_12 {dimension_numbers = #tpu.dot_dimension_numbers<[1], [0], [0], [1], [0, 0, 1, 1], [], []>} : vector<128x8xbf16>, vector<8x16xbf16>, vector<128x16xf32> -> vector<128x16xf32>
    %20 = arith.addf %16, %19 : vector<128x16xf32>
    %c3 = arith.constant 3 : index
    %c0_13 = arith.constant 0 : index
    %c0_14 = arith.constant 0 : index
    %21 = vector.load %arg3[%c3, %c0_13, %c0_14] : memref<4x8x16xbf16, #tpu.memory_space<vmem>>, vector<1x8x16xbf16>
    %22 = vector.shape_cast %21 : vector<1x8x16xbf16> to vector<8x16xbf16>
    %cst_15 = arith.constant dense<0.000000e+00> : vector<128x16xf32>
    %23 = tpu.matmul %9, %22, %cst_15 {dimension_numbers = #tpu.dot_dimension_numbers<[1], [0], [0], [1], [0, 0, 1, 1], [], []>} : vector<128x8xbf16>, vector<8x16xbf16>, vector<128x16xf32> -> vector<128x16xf32>
    %24 = arith.addf %20, %23 : vector<128x16xf32>
    %25 = vector.shape_cast %24 : vector<128x16xf32> to vector<8x16x16xf32>
    %c0_16 = arith.constant 0 : index
    %c0_17 = arith.constant 0 : index
    %26 = vector.load %arg4[%c0_16, %c0_17] : memref<1x16xf32, #tpu.memory_space<vmem>>, vector<1x16xf32>
    %c0_18 = arith.constant 0 : index
    %c0_19 = arith.constant 0 : index
    %27 = vector.load %arg5[%c0_18, %c0_19] : memref<1x16xf32, #tpu.memory_space<vmem>>, vector<1x16xf32>
    %28 = vector.extract_strided_slice %25 {offsets = [0, 0, 0], sizes = [8, 16, 8], strides = [1, 1, 1]} : vector<8x16x16xf32> to vector<8x16x8xf32>
    %29 = vector.extract_strided_slice %26 {offsets = [0, 0], sizes = [1, 8], strides = [1, 1]} : vector<1x16xf32> to vector<1x8xf32>
    %30 = vector.shape_cast %29 : vector<1x8xf32> to vector<1x1x8xf32>
    %31 = vector.broadcast %30 : vector<1x1x8xf32> to vector<8x16x8xf32>
    %32 = arith.mulf %28, %31 : vector<8x16x8xf32>
    %33 = vector.extract_strided_slice %27 {offsets = [0, 0], sizes = [1, 8], strides = [1, 1]} : vector<1x16xf32> to vector<1x8xf32>
    %34 = vector.shape_cast %33 : vector<1x8xf32> to vector<1x1x8xf32>
    %35 = vector.broadcast %34 : vector<1x1x8xf32> to vector<8x16x8xf32>
    %36 = arith.addf %32, %35 : vector<8x16x8xf32>
    %c0_20 = arith.constant 0 : index
    %c0_21 = arith.constant 0 : index
    %c0_22 = arith.constant 0 : index
    %c0_23 = arith.constant 0 : index
    %c0_24 = arith.constant 0 : index
    %37 = vector.load %arg6[%c0_20, %c0_21, %c0_22, %c0_23, %c0_24] : memref<1x8x2x16x8xf32, #tpu.memory_space<vmem>>, vector<1x8x1x16x8xf32>
    %38 = vector.shape_cast %37 : vector<1x8x1x16x8xf32> to vector<8x16x8xf32>
    %39 = vector.shape_cast %36 : vector<8x16x8xf32> to vector<1x8x1x16x8xf32>
    tpu.vector_store %arg6[%c0_20, %c0_21, %c0_22, %c0_23, %c0_24], %39 {strides = array<i32>} : memref<1x8x2x16x8xf32, #tpu.memory_space<vmem>>, vector<1x8x1x16x8xf32>,
    %40 = vector.extract_strided_slice %25 {offsets = [0, 0, 8], sizes = [8, 16, 8], strides = [1, 1, 1]} : vector<8x16x16xf32> to vector<8x16x8xf32>
    %41 = vector.extract_strided_slice %26 {offsets = [0, 8], sizes = [1, 8], strides = [1, 1]} : vector<1x16xf32> to vector<1x8xf32>
    %42 = vector.shape_cast %41 : vector<1x8xf32> to vector<1x1x8xf32>
    %43 = vector.broadcast %42 : vector<1x1x8xf32> to vector<8x16x8xf32>
    %44 = arith.mulf %40, %43 : vector<8x16x8xf32>
    %45 = vector.extract_strided_slice %27 {offsets = [0, 8], sizes = [1, 8], strides = [1, 1]} : vector<1x16xf32> to vector<1x8xf32>
    %46 = vector.shape_cast %45 : vector<1x8xf32> to vector<1x1x8xf32>
    %47 = vector.broadcast %46 : vector<1x1x8xf32> to vector<8x16x8xf32>
    %48 = arith.addf %44, %47 : vector<8x16x8xf32>
    %c0_25 = arith.constant 0 : index
    %c0_26 = arith.constant 0 : index
    %c1_27 = arith.constant 1 : index
    %c0_28 = arith.constant 0 : index
    %c0_29 = arith.constant 0 : index
    %49 = vector.load %arg6[%c0_25, %c0_26, %c1_27, %c0_28, %c0_29] : memref<1x8x2x16x8xf32, #tpu.memory_space<vmem>>, vector<1x8x1x16x8xf32>
    %50 = vector.shape_cast %49 : vector<1x8x1x16x8xf32> to vector<8x16x8xf32>
    %51 = vector.shape_cast %48 : vector<8x16x8xf32> to vector<1x8x1x16x8xf32>
    tpu.vector_store %arg6[%c0_25, %c0_26, %c1_27, %c0_28, %c0_29], %51 {strides = array<i32>} : memref<1x8x2x16x8xf32, #tpu.memory_space<vmem>>, vector<1x8x1x16x8xf32>,
    return
  }
  func.func @transform_0(%arg0: i32, %arg1: i32) -> (i32, i32, i32, i32, i32) {
    %c0_i32 = arith.constant 0 : i32
    %c0_i32_0 = arith.constant 0 : i32
    %c0_i32_1 = arith.constant 0 : i32
    %c0_i32_2 = arith.constant 0 : i32
    return %arg0, %arg1, %c0_i32, %c0_i32_0, %c0_i32_1 : i32, i32, i32, i32, i32
  }
  func.func @transform_1(%arg0: i32, %arg1: i32) -> (i32, i32, i32) {
    %c0_i32 = arith.constant 0 : i32
    %c0_i32_0 = arith.constant 0 : i32
    %c0_i32_1 = arith.constant 0 : i32
    %c0_i32_2 = arith.constant 0 : i32
    return %c0_i32, %c0_i32_0, %c0_i32_1 : i32, i32, i32
  }
  func.func @transform_2(%arg0: i32, %arg1: i32) -> (i32, i32) {
    %c0_i32 = arith.constant 0 : i32
    %c0_i32_0 = arith.constant 0 : i32
    %c0_i32_1 = arith.constant 0 : i32
    return %c0_i32, %c0_i32_0 : i32, i32
  }
  func.func @transform_3(%arg0: i32, %arg1: i32) -> (i32, i32) {
    %c0_i32 = arith.constant 0 : i32
    %c0_i32_0 = arith.constant 0 : i32
    %c0_i32_1 = arith.constant 0 : i32
    return %c0_i32, %c0_i32_0 : i32, i32
  }
  func.func @transform_4(%arg0: i32, %arg1: i32) -> (i32, i32, i32, i32, i32) {
    %c0_i32 = arith.constant 0 : i32
    %c0_i32_0 = arith.constant 0 : i32
    %c0_i32_1 = arith.constant 0 : i32
    %c0_i32_2 = arith.constant 0 : i32
    return %arg0, %arg1, %c0_i32, %c0_i32_0, %c0_i32_1 : i32, i32, i32, i32, i32
  }
}

</mosaic_0001>

<bundles_post_ra>
// kernel: tile.18
= control target key start
LH: loop header
LB: loop body
LE: loop exit
PB: predicated region body
PF: predicated region fallthrough
CT: control target
= control target key end

     0   :  { %s22_s0 = inlined_call_operand.vmem [shape: f32[4], index: 0, kind: input, shape index: {}]   ;;  %s23_s1 = inlined_call_operand.vmem [shape: f32[4,4], index: 1, kind: output, shape index: {}]  }
   0x1   :  { %v4_v0 = vld [vmem:[%s22_s0] ss:$0 sm:$0xff] }
   0x2   :  { %5 = vst [vmem:[%s23_s1] sm:$0xf] %v4_v0 }

// kernel: tile.19
= control target key start
LH: loop header
LB: loop body
LE: loop exit
PB: predicated region body
PF: predicated region fallthrough
CT: control target
= control target key end

     0   :  { %s101_s0 = inlined_call_operand.vmem [shape: f32[4,4], index: 0, kind: input, shape index: {}]   ;;  %s102_s1 = inlined_call_operand.hbm [shape: f32[1,16], index: 1, kind: output, shape index: {}]  }
   0x1   :  { %v5_v0 = vld [vmem:[%s101_s0] sm:$0xf] }
   0x2   :  { %6 = vst [vmem:[#allocation3] sm:$0xf] %v5_v0 }
   0x3   :  { %2 = vsyncpa [#allocation1], 0  ;;  %vm8_vm0 = vcmask 31744   ;;  %s72_s0 = smov 12   ;;  %s73_s8 = smov 4   ;;  %vm14_vm1 = vcmask 130144  }
   0x4   :  { %s74_s9 = smov 8   ;;  %vm20_vm2 = vcmask 97344   ;;  %vm26_vm3 = vcmask 64544   ;;  %s75_s10 = smov [#allocation0]  }
   0x5   :  { %s38_s11 = sshll.u32 %s75_s10, 4  ;;  %s39_s11 = int_to_ptr.vmem [resolvable:$true] %s38_s11 }
   0x6   :  { %s48_s12 = scalar_lea.vmem %s39_s11, 16  ;;  %s52_s13 = scalar_lea.vmem %s39_s11, 32 }
   0x7   :  { %p49_p0 = scmp.ne.s32.totalorder %s39_s11, %s48_s12  ;;  %p53_p1 = scmp.lt.s32.totalorder %s39_s11, %s39_s11 }
   0x8   :  { %p54_p2 = scmp.lt.s32.totalorder %s52_s13, %s48_s12 }
   0x9   :  { %v11_v1 = vld [vmem:[#allocation3 + $0x3] sm:$0x1]   ;;  %v23_v2 = vld [vmem:[#allocation3 + $0x1] sm:$0x1]   ;;  %v7_v3 = vld [vmem:[#allocation3] sm:$0x1]  }
   0xa   :  { %12 = vrot.lane.b32.xlu0 %v11_v1, %s72_s0  ;;  %24 = vrot.lane.b32.xlu1 %v23_v2, %s73_s8  ;;  %v17_v4 = vld [vmem:[#allocation3 + $0x2] sm:$0x1]   ;;  %9 = vst.msk [vmem:[#allocation2] sm:$0x1] %vm8_vm0, %v7_v3   ;;  %p55_p3 = por %p54_p2, %p53_p1 }
   0xc   :  { %p56_p4 = pnand %p55_p3, %p49_p0 }
   0xe   :  { %18 = vrot.lane.b32.xlu0 %v17_v4, %s74_s9 }
  0x7c   :  { %v13_v5 = vpop.permute.xlu0 %12   ;;  %v25_v6 = vpop.permute.xlu1 %24  }
  0x7d   :  { %15 = vst.msk [vmem:[#allocation2] sm:$0x1] %vm14_vm1, %v13_v5  }
  0x80   :  { %v19_v7 = vpop.permute.xlu0 %18  }
  0x81   :  { %21 = vst.msk [vmem:[#allocation2] sm:$0x1] %vm20_vm2, %v19_v7  }
  0x82   :  { %27 = vst.msk [vmem:[#allocation2] sm:$0x1] %vm26_vm3, %v25_v6  }
  0x89   :  { %v31_v8 = vld [vmem:[#allocation2] sm:$0x1] }
  0x8a   :  { %33 = vst [vmem:[#allocation0] sm:$0x1] %v31_v8 }
  0x8b   :  { %59 = shalt.err (!%p56_p4)
}
  0x8c   :  { %s60_s16 = scalar_lea.hbm %s102_s1, 16 }
  0x8d   :  { %p61_p5 = scmp.ne.s32.totalorder %s102_s1, %s60_s16  ;;  %p64_p6 = scmp.lt.u32.totalorder %s60_s16, %s102_s1 }
  0x8f   :  { %p66_p7 = pnand %p64_p6, %p61_p5 }
  0x91   :  { %69 = shalt.err (!%p66_p7)
}
  0x92   :  { %41 = dma.vmem_to_hbm [thread:$0]  %s39_s11, 16, %s102_s1, [#allocation1]  }
  0x93   :  { %70 = dma.done.wait [#allocation1], 16  }
  0x94   :  { %71 = vsyncadd [#allocation1], 4294967280 }
  0x95   :  { %43 = vsyncpa [#allocation1], 1 }

// kernel: up_forward.2
= control target key start
LH: loop header
LB: loop body
LE: loop exit
PB: predicated region body
PF: predicated region fallthrough
CT: control target
= control target key end

     0   :  { %s2375_s0 = inlined_call_operand.hbm [shape: bf16[2,2,9,17,8], index: 0, kind: input, shape index: {}]   ;;  %s2376_s1 = inlined_call_operand.hbm [shape: bf16[4,8,16], index: 1, kind: input, shape index: {}]   ;;  %s2377_s2 = inlined_call_operand.hbm [shape: f32[2,2,1,16], index: 2, kind: output, shape index: {0}]   ;;  %s2378_s3 = inlined_call_operand.hbm [shape: f32[2,2,1,16], index: 3, kind: output, shape index: {1}]  }
   0x1   :  { %2388 = sst [smem:[#allocation17_spill]] %s2376_s1 }
   0x2   :  { %9 = vsyncpa [#allocation3], 0 }
   0x3   :  { %11 = vsyncpa [#allocation3 + $0x1], 0 }
   0x4   :  { %12 = vsyncpa [#allocation6], 0 }
   0x5   :  { %13 = vsyncpa [#allocation4], 0 }
   0x6   :  { %15 = vsyncpa [#allocation4 + $0x1], 0 }
   0x7   :  { %16 = vsyncpa [#allocation9], 0 }
   0x8   :  { %18 = vsyncpa [#allocation9 + $0x1], 0  ;;  %s1878_s12 = smov 0   ;;  %s1880_s13 = smov 0  }
   0x9   :  { %s1882_s14 = smov 0   ;;  %s1884_s15 = smov 0  }
   0xa   :  { %s1886_s16 = smov 0   ;;  %s1888_s17 = smov 0  }
   0xb   :  { %s1890_s18 = smov 0   ;;  %s1892_s19 = smov 0  }
   0xc LB: > { %2389 = sst [smem:[#allocation14_spill]] %s1841_s17  ;;  %s1323_s20 = sadd.s32 4294967295, %s1849_s19   ;;  %s1849_s19 = sphi %s1892_s19, %s24_s19   ;;  %s1845_s18 = sphi %s1890_s18, %s2417_s18   ;;  %s1841_s17 = sphi %s1888_s17, %s2411_s17   ;;  %s1837_s16 = sphi %s1886_s16, %s2416_s16   ;;  %s1833_s15 = sphi %s1884_s15, %s2410_s15   ;;  %s1829_s14 = sphi %s1882_s14, %s2415_s14   ;;  %s1825_s13 = sphi %s1880_s13, %s2414_s13   ;;  %s1821_s12 = sphi %s1878_s12, %s2413_s12  }
   0xd   : > { %s1324_s21 = sadd.s32 4294967294, %s1849_s19   ;;  %p67_p0 = scmp.ne.s32.totalorder %s1825_s13, %s1821_s12 }
   0xe   : > { %p1922_p1 = scmp.eq.s32.totalorder %s1323_s20, 0  ;;  %p1926_p2 = scmp.eq.s32.totalorder %s1323_s20, 3 }
   0xf   : > { %p120_p3 = scmp.eq.s32.totalorder %s1324_s21, 3  ;;  %p1325_p5 = scmp.ge.s32.totalorder %s1849_s19, 1 }
  0x10   : > { %s2390_s22 = scalar_select %p1922_p1, 1, 0 }
  0x11   : > { %s2391_s23 = scalar_select %p1926_p2, 1, 0 }
  0x12   : > { %p1932_p4 = por %p1922_p1, %p67_p0  ;;  %p1937_p6 = por %p120_p3, %p67_p0 }
  0x13   : > { %p155_p7 = scmp.lt.s32.totalorder %s1849_s19, 5  ;;  %s1851_s27 = smov [#allocation5]  }
  0x14   : > { %s2392_s24 = scalar_select %p1932_p4, 1, 0 }
  0x15   : > { %s2393_s25 = scalar_select %p1937_p6, 1, 0 }
  0x16   : > { %p1942_p8 = pnand %p1325_p5, %p155_p7  ;;  %s167_s28 = sshll.u32 %s1851_s27, 4  ;;  %s168_s28 = int_to_ptr.vmem [resolvable:$true] %s167_s28 }
  0x17   : > { %s2396_s1 = sld [smem:[#allocation17_spill]] }
  0x18   : > { %s2394_s26 = scalar_select %p1942_p8, 1, 0 }
  0x19   : > { %p1561_p9 = pneg %p1942_p8 }
  0x1b   : > { %p1950_p10 = pnand %p1561_p9, %p1922_p1 }
  0x1d   : > { %s1657_s5 = scalar_lea.hbm %s2396_s1, 256  ;;  %p1659_p12 = pneg %p1950_p10 }
  0x1e   : > { %p1658_p11 = scmp.ne.s32.totalorder %s2396_s1, %s1657_s5  ;;  %p1664_p3 = scmp.lt.u32.totalorder %s1657_s5, %s2396_s1 }
  0x20   : > { %p1660_p13 = pnand %p1659_p12, %p1658_p11 }
  0x22   : > { %p1661_p0 = pneg %p1660_p13 }
  0x24   : > { %p1666_p5 = pnand %p1664_p3, %p1661_p0 }
  0x26   : > { %1669 = shalt.err (!%p1666_p5)
}
  0x27   : > { %s1670_s10 = scalar_lea.vmem %s168_s28, 256  ;;  %p1678_p1 = scmp.lt.s32.totalorder %s168_s28, %s168_s28 }
  0x28   : > { %p1671_p7 = scmp.ne.s32.totalorder %s168_s28, %s1670_s10  ;;  %p1679_p4 = scmp.lt.s32.totalorder %s1670_s10, %s1670_s10 }
  0x2a   : > { %p1673_p9 = pnand %p1671_p7, %p1659_p12  ;;  %p1680_p8 = por %p1679_p4, %p1678_p1 }
  0x2c   : > { %p1674_p6 = pneg %p1673_p9 }
  0x2e   : > { %p1681_p2 = pnand %p1680_p8, %p1674_p6 }
  0x30   : > { %1684 = shalt.err (!%p1681_p2)
}
  0x31   : > { %s2383_s11 = smov 64   ;;  %s2384_s20 = smov 4  }
  0x32   : > { %1564 = dma.hbm_to_vmem [thread:$0]  (!%p1950_p10), %s2396_s1, 256, %s168_s28, [#allocation6], %s2383_s11, %s2383_s11, %s2384_s20  }
  0x33   : > { %s39_s30 = sadd.s32 1, %s1841_s17  ;;  %s43_s4 = sadd.s32 1, %s1845_s18 }
  0x34   : > { %p41_p1 = scmp.ge.s32.totalorder %s39_s30, 2  ;;  %s54_s5 = sadd.s32 1, %s1829_s14 }
  0x35   : > { %p61_p2 = scmp.ne.s32.totalorder %s1829_s14, %s1825_s13  ;;  %p62_p4 = scmp.eq.s32.totalorder %s1849_s19, 0 }
  0x36   : > { %s2419_s30 = smov (%p41_p1, %s39_s30), 0  ;;  %s2421_s4 = smov (!%p41_p1, %s43_s4), %s1845_s18 }
  0x37   : > { %2397 = sst [smem:[#allocation15_spill]] %s2419_s30  ;;  %s50_s29 = ssub.s32 %s1841_s17, %s2419_s30 }
  0x38   : > { %p45_p6 = scmp.ge.s32.totalorder %s2421_s4, 2  ;;  %p2398_p8 = scmp.ne.s32.totalorder %s2391_s23, 0 }
  0x39   : > { %p63_p10 = por %p62_p4, %p61_p2  ;;  %p1577_p12 = scmp.lt.s32.totalorder %s1849_s19, 4 }
  0x3a   : > { %p1986_p11 = por %p2398_p8, %p61_p2  ;;  %s2423_s4 = smov (%p45_p6, %s2421_s4), 0 }
  0x3b   : > { %2400 = sst [smem:[#allocation16_spill]] %s2423_s4  ;;  %s181_s28 = sand.u32 1, %s1829_s14  }
  0x3c   : > { %s1548_s7 = smul.u32 27, %s1841_s17  ;;  %s49_s8 = ssub.s32 %s1845_s18, %s2423_s4 }
  0x3d   : > { %s51_s9 = sor.u32 %s50_s29, %s49_s8  ;;  %s1547_s10 = smul.u32 108, %s181_s28 }
  0x3e   : > { %p52_p13 = scmp.eq.s32.totalorder %s51_s9, 0  ;;  %s1549_s21 = smul.u32 54, %s1845_s18 }
  0x3f   : > { %p1998_p0 = pnand %p1577_p12, %p63_p10  ;;  %s185_s20 = scalar_lea.vmem [#allocation2], %s1547_s10 }
  0x40   : > { %s2003_s23 = scalar_select %p52_p13, %s1829_s14, %s54_s5  }
  0x41   : > { %s192_s11 = sadd.s32 %s1549_s21, %s1548_s7  ;;  %s195_s1 = sshll.u32 %s185_s20, 4  ;;  %s2005_s1 = int_to_ptr.vmem [resolvable:$true] %s195_s1 }
  0x42   : > { %s1328_s30 = sshll.u32 %s192_s11, 6  ;;  %s2012_s8 = scalar_lea.sflag [#allocation3], %s181_s28 }
  0x43   : > { %s2010_s29 = scalar_lea.hbm %s2375_s0, %s1328_s30  ;;  %p1687_p5 = pneg %p1998_p0 }
  0x44   : > { %s1685_s9 = scalar_lea.hbm %s2010_s29, 1728  ;;  %s1690_s17 = scalar_lea.hbm %s2375_s0, 6912 }
  0x45   : > { %p1686_p3 = scmp.ne.s32.totalorder %s2010_s29, %s1685_s9  ;;  %p1691_p1 = scmp.lt.u32.totalorder %s2010_s29, %s2375_s0 }
  0x46   : > { %p1692_p2 = scmp.lt.u32.totalorder %s1690_s17, %s1685_s9  ;;  %p1694_p6 = scmp.lt.u32.totalorder %s1685_s9, %s2010_s29 }
  0x47   : > { %p1688_p7 = pnand %p1687_p5, %p1686_p3 }
  0x48   : > { %p1693_p4 = por %p1692_p2, %p1691_p1 }
  0x49   : > { %p1689_p9 = pneg %p1688_p7 }
  0x4a   : > { %p1695_p8 = por %p1694_p6, %p1693_p4 }
  0x4c   : > { %p1696_p10 = pnand %p1695_p8, %p1689_p9 }
  0x4e   : > { %1699 = shalt.err (!%p1696_p10)
}
  0x4f   : > { %s1700_s5 = scalar_lea.vmem %s2005_s1, 1728  ;;  %s1854_s28 = smov [#allocation2]  }
  0x50   : > { %p1701_p12 = scmp.ne.s32.totalorder %s2005_s1, %s1700_s5  ;;  %s1705_s7 = sshll.u32 %s1854_s28, 4  ;;  %s1706_s7 = int_to_ptr.vmem [resolvable:$false] %s1705_s7 }
  0x51   : > { %s1707_s10 = scalar_lea.vmem %s1706_s7, 3456  ;;  %p1708_p7 = scmp.lt.s32.totalorder %s2005_s1, %s1706_s7 }
  0x52   : > { %p1703_p13 = pnand %p1701_p12, %p1687_p5  ;;  %p1709_p1 = scmp.lt.s32.totalorder %s1707_s10, %s1700_s5 }
  0x54   : > { %p1704_p3 = pneg %p1703_p13  ;;  %p1710_p2 = por %p1709_p1, %p1708_p7 }
  0x56   : > { %p1711_p4 = pnand %p1710_p2, %p1704_p3 }
  0x58   : > { %1714 = shalt.err (!%p1711_p4)
}
  0x59   : > { %s2402_s21 = smov 4   ;;  %s2403_s9 = smov 64  }
  0x5a   : > { %1568 = dma.hbm_to_vmem [thread:$0]  (!%p1998_p0), %s2010_s29, 1728, %s2005_s1, %s2012_s8, %s2403_s9, %s2403_s9, %s2402_s21  }
  0x5b   : > { %p2404_p5 = scmp.ne.s32.totalorder %s2394_s26, 0 }
  0x5c   : > { %s2046_s11 = sand.u32 (!%p2404_p5), 1, %s1825_s13   ;;  %p2405_p9 = scmp.ne.s32.totalorder (!%p2404_p5), %s2392_s24, 0 }
  0x5d   : > { %207 = sbr.rel (%p2404_p5) target bundleno = 458 (0x1ca), region = 28  ;;  %s210_s17 = scalar_lea.sflag (!%p2404_p5), [#allocation3], %s2046_s11 }
  0x5e   : > { %s1550_s20 = smul.u32 (!%p2404_p5), 108, %s2046_s11 }
  0x60   : > { %s2050_s30 = scalar_lea.vmem (!%p2404_p5), [#allocation2], %s1550_s20 }
  0x64   : > { %1804 = dma.done.wait (%p2405_p9), %s210_s17, 1728  }
  0x65   : > { %1806 = vsyncadd (%p2405_p9), %s210_s17, 4294965568  ;;  %p2406_p0 = scmp.ne.s32.totalorder %s2390_s22, 0 }
  0x67   : > { %1808 = dma.done.wait (%p2406_p0), [#allocation6], 256  }
  0x68   : > { %1810 = vsyncadd (%p2406_p0), [#allocation6], 4294967040  ;;  %vm543_vm0 = vcmask 1043456   ;;  %vm518_vm1 = vcmask 64512   ;;  %vm272_vm2 = vsmask.f32 3328 }
  0x69   : > { %v809_v0 = vld [vmem:[#allocation5 + $0x8] sm:$0xf]  ;;  %v248_v1 = vld [vmem:[%s2050_s30 + $0xc] sm:$0xf]  ;;  %v249_v2 = vld [vmem:[%s2050_s30 + $0x10] sm:$0xf] }
  0x6a   : > { %1545 = vmatprep.subr.msk.bf16.mxu0 %vm543_vm0, %v809_v0  ;;  %v819_v3 = vsel %vm543_vm0, %v809_v0, 0  ;;  %v300_v4 = vshrl.u32 %v248_v1, 16  ;;  %v303_v5 = vshll.u32 %v248_v1, 16  ;;  %v309_v6 = vshll.u32 %v249_v2, 16  ;;  %v251_v7 = vld [vmem:[%s2050_s30 + $0x18] sm:$0xf] }
  0x6b   : > { %1460 = vmatpush3.bf16.msra.mxu0 %v819_v3  ;;  %v313_v8 = vshrl.u32 %v249_v2, 16  ;;  %v2065_v9 = vcombine.low %v248_v1, %v249_v2  ;;  %v252_v10 = vld [vmem:[%s2050_s30 + $0x1c] sm:$0xf]  ;;  %v324_v11 = vshrl.u32 %v251_v7, 16  ;;  %v327_v12 = vshll.u32 %v251_v7, 16  ;;  %s2238_s1 = scalar_lea.vmem [#allocation7], %s2046_s11 }
  0x6c   : > { %v302_v13 = vrot.slane %v300_v4, 4  ;;  %v305_v14 = vrot.slane %v303_v5, 5  ;;  %v2068_v15 = vrot.slane %v309_v6, 5  ;;  %v333_v16 = vshll.u32 %v252_v10, 16  ;;  %v493_v17 = vld [vmem:[#allocation5 + $0x4] sm:$0xf] }
  0x6d   : > { %v315_v18 = vrot.slane %v313_v8, 4  ;;  %1461 = vmatprep.mubr.msk.bf16.mxu0 %vm518_vm1, %v2065_v9  ;;  %v337_v19 = vshrl.u32 %v252_v10, 16  ;;  %1543 = vmatprep.subr.msk.bf16.mxu1 %vm543_vm0, %v493_v17  ;;  %v2074_v20 = vld [vmem:[%s2050_s30] sm:$0xf]  ;;  %vm273_vm3 = vsmask.f32 7440  ;;  %v2078_v23 = vcombine.low %v251_v7, %v252_v10 }
  0x6e   : > { %v306_v21 = vor.u32 %v305_v14, %v302_v13  ;;  %v2076_v22 = vrot.slane %v324_v11, 4  ;;  %v545_v24 = vsel %vm543_vm0, %v493_v17, 0  ;;  %v2082_v25 = vld [vmem:[%s2050_s30 + $0x4] sm:$0xf]  ;;  %v247_v26 = vld [vmem:[%s2050_s30 + $0x8] sm:$0x1]  ;;  %vm2101_vm4 = vmor %vm272_vm2, %vm273_vm3 }
  0x6f   : > { %v316_v27 = vor.u32 %v315_v18, %v2068_v15  ;;  %v2086_v28 = vrot.slane %v327_v12, 5  ;;  %1424 = vmatpush3.bf16.msra.mxu1 %v545_v24  ;;  %v276_v29 = vshrl.u32 %v2074_v20, 16  ;;  %v279_v30 = vshll.u32 %v2074_v20, 16  ;;  %v491_v31 = vld [vmem:[#allocation5] sm:$0xf]  ;;  %1462 = vmatmul.mubr.msk.bf16.vlgmr.msra.gmra.mrb[0].mxu0 %vm518_vm1, %v2078_v23  ;;  %s2243_s22 = scalar_lea.vmem [#allocation8], %s2046_s11 }
  0x70   : > { %v2090_v32 = vrot.slane %v333_v16, 5  ;;  %v285_v33 = vshll.u32 %v2082_v25, 16  ;;  %v289_v34 = vshrl.u32 %v2082_v25, 16  ;;  %v295_v35 = vshll.u32 %v247_v26, 16  ;;  %1544 = vmatprep.subr.msk.bf16.mxu1 %vm543_vm0, %v491_v31  ;;  %v254_v36 = vld [vmem:[%s2050_s30 + $0x24] sm:$0xf] }
  0x71   : > { %v339_v37 = vrot.slane %v337_v19, 4  ;;  %v278_v38 = vrot.slane %v276_v29, 4  ;;  %v281_v39 = vrot.slane %v279_v30, 5  ;;  %v255_v40 = vld [vmem:[%s2050_s30 + $0x28] sm:$0xf]  ;;  %v348_v41 = vshrl.u32 %v254_v36, 16 }
  0x72   : > { %v307_v42 = vrot.slane %v306_v21, 4  ;;  %v287_v43 = vrot.slane %v285_v33, 5  ;;  %v291_v44 = vrot.slane %v289_v34, 4  ;;  %v351_v45 = vshll.u32 %v254_v36, 16  ;;  %v935_v46 = vld [vmem:[#allocation5 + $0xc] sm:$0xf] }
  0x73   : > { %v317_v47 = vrot.slane %v316_v27, 4  ;;  %v282_v49 = vor.u32 %v281_v39, %v278_v38  ;;  %v357_v50 = vshll.u32 %v255_v40, 16  ;;  %v361_v51 = vshrl.u32 %v255_v40, 16  ;;  %1546 = vmatprep.subr.msk.bf16.mxu0 %vm543_vm0, %v935_v46  ;;  %v250_v52 = vld [vmem:[%s2050_s30 + $0x14] sm:$0x1]  ;;  %s1381_s24 = sshll.u32 %s1837_s16, 1 }
  0x74   : > { %v292_v53 = vor.u32 %v291_v44, %v287_v43  ;;  %v297_v54 = vrot.slane %v295_v35, 5  ;;  %v350_v55 = vrot.slane %v348_v41, 4  ;;  %v2107_v56 = vcombine.low %v254_v36, %v255_v40  ;;  %v257_v59 = vld [vmem:[%s2050_s30 + $0x30] sm:$0xf]  ;;  %v258_v60 = vld [vmem:[%s2050_s30 + $0x34] sm:$0xf]  ;;  %s1178_s26 = sadd.s32 %s1833_s15, %s1381_s24 }
  0x75   : > { %v283_v57 = vrot.slane %v282_v49, 4  ;;  %v319_v58 = vshll.u32 %v250_v52, 16  ;;  %v353_v62 = vrot.slane %v351_v45, 5  ;;  %v2111_v63 = vrot.slane %v357_v50, 5  ;;  %v253_v10 = vld [vmem:[%s2050_s30 + $0x20] sm:$0x1] }
  0x76   : > { %v293_v61 = vrot.slane %v292_v53, 4  ;;  %1465 = vmatprep.mubr.msk.bf16.mxu0 %vm518_vm1, %v2107_v56  ;;  %v312_v0 = vsel %vm2101_vm4, %v307_v42, %v2068_v15  ;;  %v363_v2 = vrot.slane %v361_v51, 4  ;;  %v372_v4 = vshrl.u32 %v257_v59, 16  ;;  %v260_v11 = vld [vmem:[%s2050_s30 + $0x3c] sm:$0xf]  ;;  %s1382_s27 = sshll.u32 %s1178_s26, 4 }
  0x77   : > { %v288_v1 = vsel %vm2101_vm4, %v283_v57, %v287_v43  ;;  %v321_v3 = vrot.slane %v319_v58, 5  ;;  %v709_v6 = vsel %vm543_vm0, %v491_v31, 0  ;;  %v375_v7 = vshll.u32 %v257_v59, 16  ;;  %v261_v16 = vld [vmem:[%s2050_s30 + $0x40] sm:$0xf]  ;;  %s1182_s29 = sshll.u32 %s2238_s1, 4  ;;  %s2287_s5 = scalar_lea.hbm %s2377_s2, %s1382_s27  ;;  %s2289_s29 = int_to_ptr.vmem [resolvable:$true] %s1182_s29 }
  0x78   : > { %v298_v5 = vsel %vm2101_vm4, %v293_v61, %v297_v54  ;;  %v2123_v8 = vcombine.low %v257_v59, %v258_v60  ;;  %v381_v14 = vshll.u32 %v258_v60, 16  ;;  %v385_v15 = vshrl.u32 %v258_v60, 16  ;;  %v256_v35 = vld [vmem:[%s2050_s30 + $0x2c] sm:$0x1]  ;;  %v263_v42 = vld [vmem:[%s2050_s30 + $0x48] sm:$0xf]  ;;  %s2297_s7 = scalar_lea.hbm %s2378_s3, %s1382_s27 }
  0x79   : > { %v1331_v12 = vcombine.low %v288_v1, %v298_v5  ;;  %v322_v13 = vsel %vm2101_vm4, %v317_v47, %v321_v3  ;;  %v943_v18 = vsel %vm543_vm0, %v935_v46, 0  ;;  %v330_v19 = vor.u32 %v2086_v28, %v2076_v22  ;;  %v264_v47 = vld [vmem:[%s2050_s30 + $0x4c] sm:$0xf]  ;;  %v259_v52 = vld [vmem:[%s2050_s30 + $0x38] sm:$0x1]  ;;  %s1197_s8 = sshll.u32 %s2243_s22, 4  ;;  %s2299_s8 = int_to_ptr.vmem [resolvable:$true] %s1197_s8 }
  0x7a   : > { %v2130_v17 = vcombine.low %v312_v0, %v322_v13  ;;  %1466 = vmatmul.mubr.msk.bf16.gmra.mrb[4].mxu0 %vm518_vm1, %v2123_v8  ;;  %v340_v21 = vor.u32 %v339_v37, %v2090_v32  ;;  %v374_v24 = vrot.slane %v372_v4, 4  ;;  %v343_v26 = vshll.u32 %v253_v10, 16  ;;  %v266_v58 = vld [vmem:[%s2050_s30 + $0x54] sm:$0xf]  ;;  %v267_v0 = vld [vmem:[%s2050_s30 + $0x58] sm:$0xf] }
  0x7b   : > { %1425 = vmatprep.mubr.msk.bf16.mxu1 %vm518_vm1, %v1331_v12  ;;  %1478 = vmatpush3.bf16.msra.mxu0 %v943_v18  ;;  %v396_v27 = vshrl.u32 %v260_v11, 16  ;;  %v399_v29 = vshll.u32 %v260_v11, 16  ;;  %v331_v30 = vrot.slane %v330_v19, 4  ;;  %v405_v33 = vshll.u32 %v261_v16, 16  ;;  %s1164_s10 = scalar_lea.sflag [#allocation4], %s2046_s11  ;;  %s1715_s21 = scalar_lea.vmem %s2289_s29, 16 }
  0x7c   : > { %1426 = vmatmul.mubr.msk.bf16.vlgmr.msra.gmra.mrb[0].mxu1 %vm518_vm1, %v2130_v17  ;;  %v341_v31 = vrot.slane %v340_v21, 4  ;;  %v2141_v34 = vcombine.low %v260_v11, %v261_v16  ;;  %v377_v22 = vrot.slane %v375_v7, 5  ;;  %v383_v28 = vrot.slane %v381_v14, 5  ;;  %v262_v14 = vld [vmem:[%s2050_s30 + $0x44] sm:$0x1]  ;;  %p1716_p6 = scmp.ne.s32.totalorder %s2289_s29, %s1715_s21  ;;  %s1856_s9 = smov [#allocation7]  }
  0x7d   : > { %1442 = vmatpush3.bf16.msra.mxu1 %v709_v6  ;;  %v345_v36 = vrot.slane %v343_v26, 5  ;;  %v409_v37 = vshrl.u32 %v261_v16, 16  ;;  %v387_v38 = vrot.slane %v385_v15, 4  ;;  %v336_v39 = vsel %vm2101_vm4, %v331_v30, %v2090_v32  ;;  %v270_v30 = vld [vmem:[%s2050_s30 + $0x64] sm:$0xf]  ;;  %s1719_s20 = sshll.u32 %s1856_s9, 4  ;;  %s1720_s20 = int_to_ptr.vmem [resolvable:$false] %s1719_s20 }
  0x7e   : > { %1469 = vmatprep.mubr.msk.bf16.mxu0 %vm518_vm1, %v2141_v34  ;;  %v354_v40 = vor.u32 %v353_v62, %v350_v55  ;;  %v364_v41 = vor.u32 %v363_v2, %v2111_v63  ;;  %v398_v44 = vrot.slane %v396_v27, 4  ;;  %v401_v45 = vrot.slane %v399_v29, 5  ;;  %v269_v29 = vld [vmem:[%s2050_s30 + $0x60] sm:$0xf]  ;;  %p1717_p8 = pnand %p1716_p6, %p1986_p11  ;;  %s1721_s17 = scalar_lea.vmem %s1720_s20, 32 }
  0x7f   : > { %v346_v43 = vsel %vm2101_vm4, %v341_v31, %v345_v36  ;;  %v367_v46 = vshll.u32 %v256_v35, 16  ;;  %v407_v50 = vrot.slane %v405_v33, 5  ;;  %v411_v53 = vrot.slane %v409_v37, 4  ;;  %p1722_p12 = scmp.lt.s32.totalorder %s2289_s29, %s1720_s20  ;;  %p1723_p13 = scmp.lt.s32.totalorder %s1721_s17, %s1715_s21 }
  0x80   : > { %v2154_v49 = vcombine.low %v336_v39, %v346_v43  ;;  %v355_v32 = vrot.slane %v354_v40, 4  ;;  %v365_v51 = vrot.slane %v364_v41, 4  ;;  %v420_v55 = vshrl.u32 %v263_v42, 16  ;;  %v265_v39 = vld [vmem:[%s2050_s30 + $0x50] sm:$0x1]  ;;  %p1718_p10 = pneg %p1717_p8 }
  0x81   : > { %v369_v54 = vrot.slane %v367_v46, 5  ;;  %v423_v57 = vshll.u32 %v263_v42, 16  ;;  %v429_v60 = vshll.u32 %v264_v47, 16  ;;  %v2163_v61 = vcombine.low %v263_v42, %v264_v47  ;;  %v268_v43 = vld [vmem:[%s2050_s30 + $0x5c] sm:$0x1]  ;;  %p1724_p3 = por %p1723_p13, %p1722_p12 }
  0x82   : > { %1429 = vmatprep.mubr.msk.bf16.mxu1 %vm518_vm1, %v2154_v49  ;;  %v360_v59 = vsel %vm2101_vm4, %v355_v32, %v2111_v63  ;;  %v378_v62 = vor.u32 %v377_v22, %v374_v24  ;;  %v433_v2 = vshrl.u32 %v264_v47, 16  ;;  %v388_v3 = vor.u32 %v387_v38, %v383_v28 }
  0x83   : > { %v370_v1 = vsel %vm2101_vm4, %v365_v51, %v369_v54  ;;  %v391_v4 = vshll.u32 %v259_v52, 16  ;;  %1470 = vmatmul.mubr.msk.bf16.gmra.mrb[8].mxu0 %vm518_vm1, %v2163_v61  ;;  %v444_v7 = vshrl.u32 %v266_v58, 16  ;;  %v447_v63 = vshll.u32 %v266_v58, 16  ;;  %p1725_p7 = pnand %p1724_p3, %p1718_p10 }
  0x84   : > { %v2168_v5 = vcombine.low %v360_v59, %v370_v1  ;;  %v379_v6 = vrot.slane %v378_v62, 4  ;;  %v389_v10 = vrot.slane %v388_v3, 4  ;;  %v453_v12 = vshll.u32 %v267_v0, 16 }
  0x85   : > { %v393_v11 = vrot.slane %v391_v4, 5  ;;  %v457_v13 = vshrl.u32 %v267_v0, 16  ;;  %v422_v15 = vrot.slane %v420_v55, 4  ;;  %v425_v16 = vrot.slane %v423_v57, 5 }
  0x86   : > { %1430 = vmatmul.mubr.msk.bf16.gmra.mrb[4].mxu1 %vm518_vm1, %v2168_v5  ;;  %v384_v18 = vsel %vm2101_vm4, %v379_v6, %v383_v28  ;;  %v2177_v19 = vcombine.low %v266_v58, %v267_v0  ;;  %v431_v21 = vrot.slane %v429_v60, 5  ;;  %v435_v24 = vrot.slane %v433_v2, 4 }
  0x87   : > { %v394_v26 = vsel %vm2101_vm4, %v389_v10, %v393_v11  ;;  %v402_v27 = vor.u32 %v401_v45, %v398_v44  ;;  %v446_v33 = vrot.slane %v444_v7, 4  ;;  %v412_v35 = vor.u32 %v411_v53, %v407_v50 }
  0x88   : > { %v1335_v31 = vcombine.low %v384_v18, %v394_v26  ;;  %1473 = vmatprep.mubr.msk.bf16.mxu0 %vm518_vm1, %v2177_v19  ;;  %v415_v22 = vshll.u32 %v262_v14, 16  ;;  %v449_v28 = vrot.slane %v447_v63, 5  ;;  %v455_v36 = vrot.slane %v453_v12, 5 }
  0x89   : > { %v459_v37 = vrot.slane %v457_v13, 4  ;;  %v403_v38 = vrot.slane %v402_v27, 4  ;;  %v413_v40 = vrot.slane %v412_v35, 4  ;;  %v1363_v42 = vcombine.low %v269_v29, %v270_v30 }
  0x8a   : > { %1433 = vmatprep.mubr.msk.bf16.mxu1 %vm518_vm1, %v1335_v31  ;;  %v417_v41 = vrot.slane %v415_v22, 5  ;;  %v426_v46 = vor.u32 %v425_v16, %v422_v15  ;;  %v436_v47 = vor.u32 %v435_v24, %v431_v21  ;;  %v439_v32 = vshll.u32 %v265_v39, 16  ;;  %v271_v15 = vld [vmem:[%s2050_s30 + $0x68] sm:$0x1] }
  0x8b   : > { %v408_v44 = vsel %vm2101_vm4, %v403_v38, %v407_v50  ;;  %1474 = vmatmul.mubr.msk.bf16.gmra.mrb[12].mxu0 %vm518_vm1, %v1363_v42  ;;  %v450_v52 = vor.u32 %v449_v28, %v446_v33  ;;  %v460_v53 = vor.u32 %v459_v37, %v455_v36  ;;  %v463_v54 = vshll.u32 %v268_v43, 16 }
  0x8c   : > { %v418_v45 = vsel %vm2101_vm4, %v413_v40, %v417_v41  ;;  %1479 = vmatprep.mubr.msk.bf16.mxu0 %vm518_vm1, %v2130_v17  ;;  %v427_v55 = vrot.slane %v426_v46, 4  ;;  %v437_v57 = vrot.slane %v436_v47, 4  ;;  %v441_v58 = vrot.slane %v439_v32, 5 }
  0x8d   : > { %v1336_v51 = vcombine.low %v408_v44, %v418_v45  ;;  %v451_v50 = vrot.slane %v450_v52, 4  ;;  %v461_v59 = vrot.slane %v460_v53, 4  ;;  %v465_v60 = vrot.slane %v463_v54, 5 }
  0x8e   : > { %v432_v62 = vsel %vm2101_vm4, %v427_v55, %v431_v21  ;;  %v442_v0 = vsel %vm2101_vm4, %v437_v57, %v441_v58  ;;  %v1347_v4 = vcombine.low %v2074_v20, %v2082_v25  ;;  %v468_v6 = vshrl.u32 %v269_v29, 16 }
  0x8f   : > { %1434 = vmatmul.mubr.msk.bf16.gmra.mrb[8].mxu1 %vm518_vm1, %v1336_v51  ;;  %v1337_v1 = vcombine.low %v432_v62, %v442_v0  ;;  %v456_v17 = vsel %vm2101_vm4, %v451_v50, %v455_v36  ;;  %v466_v2 = vsel %vm2101_vm4, %v461_v59, %v465_v60  ;;  %v471_v7 = vshll.u32 %v269_v29, 16 }
  0x90   : > { %v1338_v3 = vcombine.low %v456_v17, %v466_v2  ;;  %v477_v63 = vshll.u32 %v270_v30, 16  ;;  %v481_v10 = vshrl.u32 %v270_v30, 16  ;;  %v470_v11 = vrot.slane %v468_v6, 4 }
  0x91   : > { %1437 = vmatprep.mubr.msk.bf16.mxu1 %vm518_vm1, %v1337_v1  ;;  %v473_v12 = vrot.slane %v471_v7, 5  ;;  %vm1062_vm5 = vcmask 122880   ;;  %vm1066_vm6 = vcmask 130048  }
  0x92   : > { %v479_v13 = vrot.slane %v477_v63, 5  ;;  %v483_v14 = vrot.slane %v481_v10, 4 }
  0x93   : > { %1480 = vmatmul.mubr.msk.bf16.vlgmr.msra.gmra.mrb[0].mxu0 %vm518_vm1, %v2154_v49  ;;  %v474_v20 = vor.u32 %v473_v12, %v470_v11  ;;  %v487_v49 = vshll.u32 %v271_v15, 16 }
  0x94   : > { %1483 = vmatprep.mubr.msk.bf16.mxu0 %vm518_vm1, %v2168_v5  ;;  %v484_v25 = vor.u32 %v483_v14, %v479_v13 }
  0x95   : > { %v475_v5 = vrot.slane %v474_v20, 4  ;;  %v489_v18 = vrot.slane %v487_v49, 5 }
  0x96   : > { %v485_v16 = vrot.slane %v484_v25, 4 }
  0x97   : > { %1438 = vmatmul.mubr.msk.bf16.gmra.mrb[12].mxu1 %vm518_vm1, %v1338_v3  ;;  %v480_v21 = vsel %vm2101_vm4, %v475_v5, %v479_v13 }
  0x98   : > { %1443 = vmatprep.mubr.msk.bf16.mxu1 %vm518_vm1, %v1347_v4  ;;  %v490_v24 = vsel %vm2101_vm4, %v485_v16, %v489_v18 }
  0x9b   : > { %1484 = vmatmul.mubr.msk.bf16.gmra.mrb[4].mxu0 %vm518_vm1, %v1335_v31 }
  0x9c   : > { %1487 = vmatprep.mubr.msk.bf16.mxu0 %vm518_vm1, %v1336_v51 }
  0x9f   : > { %1444 = vmatmul.mubr.msk.bf16.vlgmr.msra.gmra.mrb[0].mxu1 %vm518_vm1, %v2065_v9  ;;  %v1372_v9 = vcombine.low %v480_v21, %v490_v24 }
  0xa0   : > { %1447 = vmatprep.mubr.msk.bf16.mxu1 %vm518_vm1, %v2078_v23  ;;  %v1855_v23 = vmov 0.0  }
  0xa1   : > { %1063 = vst.msk [vmem:[%s2238_s1] sm:$0x1] %vm1062_vm5, %v1855_v23  ;;  %1064 = vst.msk [vmem:[%s2243_s22] sm:$0x1] %vm1062_vm5, %v1855_v23 }
  0xa3   : > { %1488 = vmatmul.mubr.msk.bf16.gmra.mrb[8].mxu0 %vm518_vm1, %v1337_v1 }
  0xa4   : > { %1491 = vmatprep.mubr.msk.bf16.mxu0 %vm518_vm1, %v1338_v3 }
  0xa7   : > { %1448 = vmatmul.mubr.msk.bf16.gmra.mrb[4].mxu1 %vm518_vm1, %v2107_v56 }
  0xa8   : > { %1451 = vmatprep.mubr.msk.bf16.mxu1 %vm518_vm1, %v2123_v8 }
  0xab   : > { %1492 = vmatmul.mubr.msk.bf16.gmra.mrb[12].mxu0 %vm518_vm1, %v1372_v9 }
  0xaf   : > { %1452 = vmatmul.mubr.msk.bf16.gmra.mrb[8].mxu1 %vm518_vm1, %v2141_v34 }
  0xb0   : > { %1455 = vmatprep.mubr.msk.bf16.mxu1 %vm518_vm1, %v2163_v61 }
  0xb7   : > { %1456 = vmatmul.mubr.msk.bf16.gmra.mrb[12].mxu1 %vm518_vm1, %v2177_v19 }
 0x166   : > { %v1481_v48 = vpop.f32.mrb[0].mxu0 }
 0x167   : > { %v979_v56 = vpop.f32.mrb[1].mxu0 }
 0x168   : > { %v1482_v8 = vpop.f32.mrb[2].mxu0 }
 0x169   : > { %v982_v34 = vpop.f32.mrb[3].mxu0 }
 0x16e   : > { %v1485_v61 = vpop.f32.mrb[4].mxu0 }
 0x16f   : > { %v995_v26 = vpop.f32.mrb[5].mxu0 }
 0x170   : > { %v1486_v27 = vpop.f32.mrb[6].mxu0 }
 0x171   : > { %v998_v29 = vpop.f32.mrb[7].mxu0 }
 0x172   : > { %v1445_v19 = vpop.f32.mrb[0].mxu1 }
 0x173   : > { %v1495_v30 = vadd.f32 %v1481_v48, %v1445_v19  ;;  %v745_v31 = vpop.f32.mrb[1].mxu1 }
 0x174   : > { %v1496_v33 = vadd.f32 %v979_v56, %v745_v31  ;;  %v1446_v35 = vpop.f32.mrb[2].mxu1 }
 0x175   : > { %v1497_v22 = vadd.f32 %v1482_v8, %v1446_v35  ;;  %v748_v28 = vpop.f32.mrb[3].mxu1  ;;  %v1110_v39 = vmul.f32 %v1495_v30, %v1495_v30  ;;  %v1070_v47 = vsel %vm1066_vm6, %v1495_v30, 0.0 }
 0x176   : > { %v1108_v36 = vmul.f32 %v1496_v33, %v1496_v33  ;;  %v1498_v37 = vadd.f32 %v982_v34, %v748_v28  ;;  %v1489_v38 = vpop.f32.mrb[8].mxu0  ;;  %v1067_v40 = vsel %vm1066_vm6, %v1496_v33, 0.0 }
 0x177   : > { %v1011_v43 = vpop.f32.mrb[9].mxu0  ;;  %v1111_v44 = vmul.f32 %v1497_v22, %v1497_v22  ;;  %v1127_v50 = vsel %vm1066_vm6, %v1110_v39, 0.0  ;;  %v1072_v59 = vsel %vm1066_vm6, %v1497_v22, 0.0 }
 0x178   : > { %v1068_v41 = vsel %vm1066_vm6, %v1498_v37, 0.0  ;;  %v1109_v42 = vmul.f32 %v1498_v37, %v1498_v37  ;;  %v1490_v46 = vpop.f32.mrb[10].mxu0  ;;  %v1124_v32 = vsel %vm1066_vm6, %v1108_v36, 0.0 }
 0x179   : > { %v1069_v45 = vadd.f32 %v1068_v41, %v1067_v40  ;;  %v1014_v53 = vpop.f32.mrb[11].mxu0  ;;  %v1129_v0 = vsel %vm1066_vm6, %v1111_v44, 0.0 }
 0x17a   : > { %v1125_v51 = vsel %vm1066_vm6, %v1109_v42, 0.0  ;;  %v1449_v52 = vpop.f32.mrb[4].mxu1 }
 0x17b   : > { %v1071_v54 = vadd.f32 %v1070_v47, %v1069_v45  ;;  %v1126_v55 = vadd.f32 %v1125_v51, %v1124_v32  ;;  %v1499_v57 = vadd.f32 %v1485_v61, %v1449_v52  ;;  %v761_v58 = vpop.f32.mrb[5].mxu1 }
 0x17c   : > { %v1500_v60 = vadd.f32 %v995_v26, %v761_v58  ;;  %v1450_v62 = vpop.f32.mrb[6].mxu1 }
 0x17d   : > { %v1128_v1 = vadd.f32 %v1127_v50, %v1126_v55  ;;  %v1073_v17 = vadd.f32 %v1072_v59, %v1071_v54  ;;  %v764_v2 = vpop.f32.mrb[7].mxu1  ;;  %v1501_v6 = vadd.f32 %v1486_v27, %v1450_v62  ;;  %v1114_v15 = vmul.f32 %v1499_v57, %v1499_v57 }
 0x17e   : > { %v1074_v3 = vsel %vm1066_vm6, %v1500_v60, 0.0  ;;  %v1112_v4 = vmul.f32 %v1500_v60, %v1500_v60  ;;  %v1502_v7 = vadd.f32 %v998_v29, %v764_v2  ;;  %v1493_v11 = vpop.f32.mrb[12].mxu0  ;;  %v1078_v16 = vsel %vm1066_vm6, %v1499_v57, 0.0 }
 0x17f   : > { %v1075_v63 = vadd.f32 %v1074_v3, %v1073_v17  ;;  %v1130_v10 = vadd.f32 %v1129_v0, %v1128_v1  ;;  %v1027_v14 = vpop.f32.mrb[13].mxu0  ;;  %v1115_v24 = vmul.f32 %v1501_v6, %v1501_v6  ;;  %v1080_v8 = vsel %vm1066_vm6, %v1501_v6, 0.0 }
 0x180   : > { %v1131_v12 = vsel %vm1066_vm6, %v1112_v4, 0.0  ;;  %v1076_v13 = vsel %vm1066_vm6, %v1502_v7, 0.0  ;;  %v1113_v49 = vmul.f32 %v1502_v7, %v1502_v7  ;;  %v1494_v5 = vpop.f32.mrb[14].mxu0  ;;  %v1135_v27 = vsel %vm1066_vm6, %v1114_v15, 0.0 }
 0x181   : > { %v1132_v20 = vadd.f32 %v1131_v12, %v1130_v10  ;;  %v1077_v25 = vadd.f32 %v1076_v13, %v1075_v63  ;;  %v1030_v21 = vpop.f32.mrb[15].mxu0  ;;  %v1137_v28 = vsel %vm1066_vm6, %v1115_v24, 0.0 }
 0x182   : > { %v1453_v18 = vpop.f32.mrb[8].mxu1  ;;  %v1133_v23 = vsel %vm1066_vm6, %v1113_v49, 0.0 }
 0x183   : > { %v1079_v9 = vadd.f32 %v1078_v16, %v1077_v25  ;;  %v1503_v48 = vadd.f32 %v1489_v38, %v1453_v18  ;;  %v777_v56 = vpop.f32.mrb[9].mxu1  ;;  %v1134_v34 = vadd.f32 %v1133_v23, %v1132_v20 }
 0x184   : > { %v1504_v61 = vadd.f32 %v1011_v43, %v777_v56  ;;  %v1454_v26 = vpop.f32.mrb[10].mxu1 }
 0x185   : > { %v1081_v19 = vadd.f32 %v1080_v8, %v1079_v9  ;;  %v1505_v29 = vadd.f32 %v1490_v46, %v1454_v26  ;;  %v780_v30 = vpop.f32.mrb[11].mxu1  ;;  %v1136_v31 = vadd.f32 %v1135_v27, %v1134_v34  ;;  %v1118_v41 = vmul.f32 %v1503_v48, %v1503_v48 }
 0x186   : > { %v1082_v33 = vsel %vm1066_vm6, %v1504_v61, 0.0  ;;  %v1116_v35 = vmul.f32 %v1504_v61, %v1504_v61  ;;  %v1506_v22 = vadd.f32 %v1014_v53, %v780_v30  ;;  %v1086_v43 = vsel %vm1066_vm6, %v1503_v48, 0.0 }
 0x187   : > { %v1083_v36 = vadd.f32 %v1082_v33, %v1081_v19  ;;  %v1138_v37 = vadd.f32 %v1137_v28, %v1136_v31  ;;  %v1119_v47 = vmul.f32 %v1505_v29, %v1505_v29  ;;  %v1088_v53 = vsel %vm1066_vm6, %v1505_v29, 0.0  ;;  %v1065_v19 = vld [vmem:[%s2238_s1] sm:$0x1] }
 0x188   : > { %v1139_v38 = vsel %vm1066_vm6, %v1116_v35, 0.0  ;;  %v1084_v39 = vsel %vm1066_vm6, %v1506_v22, 0.0  ;;  %v1117_v40 = vmul.f32 %v1506_v22, %v1506_v22  ;;  %v1143_v58 = vsel %vm1066_vm6, %v1118_v41, 0.0  ;;  %v1107_v33 = vld [vmem:[%s2243_s22] sm:$0x1] }
 0x189   : > { %v1085_v42 = vadd.f32 %v1084_v39, %v1083_v36  ;;  %v1140_v44 = vadd.f32 %v1139_v38, %v1138_v37  ;;  %v1145_v2 = vsel %vm1066_vm6, %v1119_v47, 0.0 }
 0x18a   : > { %v1141_v45 = vsel %vm1066_vm6, %v1117_v40, 0.0  ;;  %v1457_v46 = vpop.f32.mrb[12].mxu1 }
 0x18b   : > { %v1087_v32 = vadd.f32 %v1086_v43, %v1085_v42  ;;  %v1507_v51 = vadd.f32 %v1493_v11, %v1457_v46  ;;  %v793_v52 = vpop.f32.mrb[13].mxu1  ;;  %v1142_v54 = vadd.f32 %v1141_v45, %v1140_v44 }
 0x18c   : > { %v1508_v55 = vadd.f32 %v1027_v14, %v793_v52  ;;  %v1458_v57 = vpop.f32.mrb[14].mxu1 }
 0x18d   : > { %v1089_v50 = vadd.f32 %v1088_v53, %v1087_v32  ;;  %v1509_v59 = vadd.f32 %v1494_v5, %v1458_v57  ;;  %v796_v60 = vpop.f32.mrb[15].mxu1  ;;  %v1144_v62 = vadd.f32 %v1143_v58, %v1142_v54  ;;  %v1122_v10 = vmul.f32 %v1507_v51, %v1507_v51 }
 0x18e   : > { %v1090_v0 = vsel %vm1066_vm6, %v1508_v55, 0.0  ;;  %v1120_v1 = vmul.f32 %v1508_v55, %v1508_v55  ;;  %v1510_v17 = vadd.f32 %v1030_v21, %v796_v60  ;;  %v1094_v12 = vsel %vm1066_vm6, %v1507_v51, 0.0 }
 0x18f   : > { %v1091_v3 = vadd.f32 %v1090_v0, %v1089_v50  ;;  %v1146_v4 = vadd.f32 %v1145_v2, %v1144_v62  ;;  %v1123_v15 = vmul.f32 %v1509_v59, %v1509_v59  ;;  %v1096_v25 = vsel %vm1066_vm6, %v1509_v59, 0.0 }
 0x190   : > { %v1147_v6 = vsel %vm1066_vm6, %v1120_v1, 0.0  ;;  %v1092_v7 = vsel %vm1066_vm6, %v1510_v17, 0.0  ;;  %v1121_v63 = vmul.f32 %v1510_v17, %v1510_v17  ;;  %v1151_v5 = vsel %vm1066_vm6, %v1122_v10, 0.0 }
 0x191   : > { %v1093_v11 = vadd.f32 %v1092_v7, %v1091_v3  ;;  %v1148_v13 = vadd.f32 %v1147_v6, %v1146_v4  ;;  %v1153_v21 = vsel %vm1066_vm6, %v1123_v15, 0.0 }
 0x192   : > { %v1149_v14 = vsel %vm1066_vm6, %v1121_v63, 0.0 }
 0x193   : > { %v1095_v20 = vadd.f32 %v1094_v12, %v1093_v11  ;;  %v1150_v49 = vadd.f32 %v1149_v14, %v1148_v13 }
 0x195   : > { %v1097_v16 = vadd.f32 %v1096_v25, %v1095_v20  ;;  %v1152_v18 = vadd.f32 %v1151_v5, %v1150_v49 }
 0x197   : > { %v1098_v24 = vrot.slane %v1097_v16, 4  ;;  %v1154_v9 = vadd.f32 %v1153_v21, %v1152_v18 }
 0x199   : > { %v1099_v23 = vadd.f32 %v1098_v24, %v1097_v16  ;;  %v1155_v48 = vrot.slane %v1154_v9, 4 }
 0x19b   : > { %v1100_v56 = vrot.slane %v1099_v23, 2  ;;  %v1156_v8 = vadd.f32 %v1155_v48, %v1154_v9 }
 0x19d   : > { %v1101_v34 = vadd.f32 %v1100_v56, %v1099_v23  ;;  %v1157_v61 = vrot.slane %v1156_v8, 2 }
 0x19f   : > { %v1102_v26 = vrot.slane %v1101_v34, 1  ;;  %v1158_v27 = vadd.f32 %v1157_v61, %v1156_v8 }
 0x1a1   : > { %v1103_v29 = vadd.f32 %v1102_v26, %v1101_v34  ;;  %v1159_v30 = vrot.slane %v1158_v27, 1 }
 0x1a3   : > { %v1104_v31 = vadd.f32 %v1103_v29, %v1065_v19  ;;  %v1160_v35 = vadd.f32 %v1159_v30, %v1158_v27 }
 0x1a5   : > { %1106 = vst.msk [vmem:[%s2238_s1] sm:$0x1] %vm1062_vm5, %v1104_v31 }
 0x1a6   : > { %1728 = shalt.err (!%p1725_p7)
}
 0x1a7   : > { %s1729_s30 = scalar_lea.hbm %s2287_s5, 16  ;;  %s1733_s26 = scalar_lea.hbm %s2377_s2, 64 }
 0x1a8   : > { %p1730_p1 = scmp.ne.s32.totalorder %s2287_s5, %s1729_s30  ;;  %p1734_p5 = scmp.lt.u32.totalorder %s2287_s5, %s2377_s2 }
 0x1a9   : > { %p1735_p9 = scmp.lt.u32.totalorder %s1733_s26, %s1729_s30  ;;  %p1737_p6 = scmp.lt.u32.totalorder %s1729_s30, %s2287_s5 }
 0x1aa   : > { %p1731_p2 = pnand %p1730_p1, %p1986_p11 }
 0x1ab   : > { %p1736_p0 = por %p1735_p9, %p1734_p5 }
 0x1ac   : > { %p1732_p4 = pneg %p1731_p2 }
 0x1ad   : > { %p1738_p8 = por %p1737_p6, %p1736_p0 }
 0x1af   : > { %p1739_p10 = pnand %p1738_p8, %p1732_p4 }
 0x1b1   : > { %1742 = shalt.err (!%p1739_p10)
}
 0x1b2   : > { %1557 = dma.vmem_to_hbm [thread:$0]  (%p1986_p11), %s2289_s29, 16, %s2287_s5, %s1164_s10   ;;  %v1161_v22 = vadd.f32 %v1160_v35, %v1107_v33 }
 0x1b3   : > { %s1168_s16 = scalar_lea.sflag [#allocation9], %s2046_s11  ;;  %s1743_s15 = scalar_lea.vmem %s2299_s8, 16 }
 0x1b4   : > { %1162 = vst.msk [vmem:[%s2243_s22] sm:$0x1] %vm1062_vm5, %v1161_v22  ;;  %p1744_p12 = scmp.ne.s32.totalorder %s2299_s8, %s1743_s15  ;;  %s1857_s28 = smov [#allocation8]  }
 0x1b5   : > { %s1747_s21 = sshll.u32 %s1857_s28, 4  ;;  %s1748_s21 = int_to_ptr.vmem [resolvable:$false] %s1747_s21 }
 0x1b6   : > { %p1745_p13 = pnand %p1744_p12, %p1986_p11  ;;  %s1749_s9 = scalar_lea.vmem %s1748_s21, 32 }
 0x1b7   : > { %p1750_p7 = scmp.lt.s32.totalorder %s2299_s8, %s1748_s21  ;;  %p1751_p1 = scmp.lt.s32.totalorder %s1749_s9, %s1743_s15 }
 0x1b8   : > { %p1746_p3 = pneg %p1745_p13 }
 0x1b9   : > { %p1752_p2 = por %p1751_p1, %p1750_p7 }
 0x1bb   : > { %p1753_p4 = pnand %p1752_p2, %p1746_p3 }
 0x1bd   : > { %1756 = shalt.err (!%p1753_p4)
}
 0x1be   : > { %s1757_s11 = scalar_lea.hbm %s2297_s7, 16  ;;  %s1761_s5 = scalar_lea.hbm %s2378_s3, 64 }
 0x1bf   : > { %p1758_p5 = scmp.ne.s32.totalorder %s2297_s7, %s1757_s11  ;;  %p1762_p6 = scmp.lt.u32.totalorder %s2297_s7, %s2378_s3 }
 0x1c0   : > { %p1763_p8 = scmp.lt.u32.totalorder %s1761_s5, %s1757_s11  ;;  %p1765_p12 = scmp.lt.u32.totalorder %s1757_s11, %s2297_s7 }
 0x1c1   : > { %p1759_p9 = pnand %p1758_p5, %p1986_p11 }
 0x1c2   : > { %p1764_p10 = por %p1763_p8, %p1762_p6 }
 0x1c3   : > { %p1760_p0 = pneg %p1759_p9 }
 0x1c4   : > { %p1766_p13 = por %p1765_p12, %p1764_p10 }
 0x1c6   : > { %p1767_p3 = pnand %p1766_p13, %p1760_p0 }
 0x1c8   : > { %1770 = shalt.err (!%p1767_p3)
}
 0x1c9   : > { %1558 = dma.vmem_to_hbm [thread:$0]  (%p1986_p11), %s2299_s8, 16, %s2297_s7, %s1168_s16  }
 0x1ca PF: > { %p1579_p7 = scmp.ge.s32.totalorder %s1849_s19, 2  ;;  %s1209_s17 = sand.u32 1, %s1821_s12  }
 0x1cb   : > { %p2409_p1 = scmp.ne.s32.totalorder %s2393_s25, 0  ;;  %s1210_s30 = scalar_lea.sflag [#allocation4], %s1209_s17 }
 0x1cd   : > { %p1570_p2 = pnand %p1579_p7, %p2409_p1 }
 0x1cf   : > { %1812 = dma.done.wait (!%p1570_p2), %s1210_s30, 16  }
 0x1d0   : > { %1814 = vsyncadd (!%p1570_p2), %s1210_s30, 4294967280  ;;  %s1218_s1 = scalar_lea.sflag [#allocation9], %s1209_s17 }
 0x1d1   : > { %1816 = dma.done.wait (!%p1570_p2), %s1218_s1, 16  }
 0x1d2   : > { %1818 = vsyncadd (!%p1570_p2), %s1218_s1, 4294967280  ;;  %s24_s19 = sadd.s32 1, %s1849_s19   ;;  %s2410_s15 = sld [smem:[#allocation14_spill]] }
 0x1d3   : > { %p21_p4 = scmp.ge.s32.totalorder %s24_s19, 6   ;;  %s2411_s17 = sld [smem:[#allocation15_spill]] }
 0x1d4   : > { %s2412_s6 = sld [smem:[#allocation16_spill]]  ;;  %s2413_s12 = smov %s1825_s13 }
 0x1d5   : > { %s2414_s13 = smov %s1829_s14  ;;  %s2415_s14 = smov %s2003_s23 }
 0x1d6   : > { %s2416_s16 = smov %s1845_s18  ;;  %23 = sbr.rel (!%p21_p4) target bundleno = 12 (0xc), region = 101 }
 0x1da   : > { %s2417_s18 = smov %s2412_s6 }
 0x1dd   :  { %1222 = vsyncpa [#allocation3], 1 }
 0x1de   :  { %1224 = vsyncpa [#allocation3 + $0x1], 1 }
 0x1df   :  { %1225 = vsyncpa [#allocation6], 1 }
 0x1e0   :  { %1226 = vsyncpa [#allocation4], 1 }
 0x1e1   :  { %1228 = vsyncpa [#allocation4 + $0x1], 1 }
 0x1e2   :  { %1229 = vsyncpa [#allocation9], 1 }
 0x1e3   :  { %1231 = vsyncpa [#allocation9 + $0x1], 1 }

// kernel: up_forward.3
= control target key start
LH: loop header
LB: loop body
LE: loop exit
PB: predicated region body
PF: predicated region fallthrough
CT: control target
= control target key end

     0   :  { %s2607_s0 = inlined_call_operand.hbm [shape: bf16[2,2,9,17,8], index: 0, kind: input, shape index: {}]   ;;  %s2608_s1 = inlined_call_operand.hbm [shape: bf16[4,8,16], index: 1, kind: input, shape index: {}]   ;;  %s2609_s2 = inlined_call_operand.hbm [shape: f32[1,16], index: 2, kind: input, shape index: {}]   ;;  %s2610_s3 = inlined_call_operand.hbm [shape: f32[1,16], index: 3, kind: input, shape index: {}]   ;;  %s2611_s4 = inlined_call_operand.hbm [shape: f32[2,16,2,16,8], index: 4, kind: output, shape index: {}]  }
   0x1   :  { %2621 = sst [smem:[#allocation17_spill]] %s2608_s1 }
   0x2   :  { %2622 = sst [smem:[#allocation18_spill]] %s2609_s2 }
   0x3   :  { %2623 = sst [smem:[#allocation19_spill]] %s2611_s4 }
   0x4   :  { %9 = vsyncpa [#allocation3], 0 }
   0x5   :  { %11 = vsyncpa [#allocation3 + $0x1], 0 }
   0x6   :  { %12 = vsyncpa [#allocation6], 0 }
   0x7   :  { %13 = vsyncpa [#allocation9], 0 }
   0x8   :  { %14 = vsyncpa [#allocation4], 0 }
   0x9   :  { %16 = vsyncpa [#allocation4 + $0x1], 0  ;;  %s2001_s15 = smov 0   ;;  %s2003_s16 = smov 0  }
   0xa   :  { %s2005_s17 = smov 0   ;;  %s2007_s18 = smov 0  }
   0xb   :  { %s2009_s19 = smov 0   ;;  %s2011_s20 = smov 0  }
   0xc   :  { %s2013_s21 = smov 0   ;;  %s2015_s22 = smov 0  }
   0xd LB: > { %2624 = sst [smem:[#allocation15_spill]] %s1936_s15  ;;  %s1368_s23 = sadd.s32 4294967295, %s1964_s22   ;;  %s1964_s22 = sphi %s2015_s22, %s22_s22   ;;  %s1960_s21 = sphi %s2013_s21, %s2655_s21   ;;  %s1956_s20 = sphi %s2011_s20, %s2654_s20   ;;  %s1952_s19 = sphi %s2009_s19, %s2653_s19   ;;  %s1948_s18 = sphi %s2007_s18, %s2652_s18   ;;  %s1944_s17 = sphi %s2005_s17, %s2651_s17   ;;  %s1940_s16 = sphi %s2003_s16, %s2650_s16   ;;  %s1936_s15 = sphi %s2001_s15, %s2649_s15  }
   0xe   : > { %s1369_s24 = sadd.s32 4294967294, %s1964_s22   ;;  %p56_p0 = scmp.ne.s32.totalorder %s1940_s16, %s1936_s15 }
   0xf   : > { %p2045_p1 = scmp.eq.s32.totalorder %s1368_s23, 0  ;;  %p2049_p2 = scmp.eq.s32.totalorder %s1368_s23, 3 }
  0x10   : > { %p151_p3 = scmp.eq.s32.totalorder %s1369_s24, 3  ;;  %p1370_p5 = scmp.ge.s32.totalorder %s1964_s22, 1 }
  0x11   : > { %s2625_s25 = scalar_select %p2045_p1, 1, 0 }
  0x12   : > { %s2626_s26 = scalar_select %p2049_p2, 1, 0 }
  0x13   : > { %p2055_p4 = por %p2045_p1, %p56_p0  ;;  %p2060_p6 = por %p151_p3, %p56_p0 }
  0x14   : > { %p158_p7 = scmp.lt.s32.totalorder %s1964_s22, 5  ;;  %s1966_s30 = smov [#allocation5]  }
  0x15   : > { %s2627_s27 = scalar_select %p2055_p4, 1, 0 }
  0x16   : > { %s2628_s28 = scalar_select %p2060_p6, 1, 0 }
  0x17   : > { %p2065_p8 = pnand %p1370_p5, %p158_p7  ;;  %s170_s5 = sshll.u32 %s1966_s30, 4  ;;  %s2069_s5 = int_to_ptr.vmem [resolvable:$true] %s170_s5 }
  0x18   : > { %2629 = sst [smem:[#allocation16_spill]] %s2628_s28  ;;  %s1967_s7 = smov [#allocation7]  }
  0x19   : > { %s2630_s29 = scalar_select %p2065_p8, 1, 0 }
  0x1a   : > { %p1637_p9 = pneg %p2065_p8  ;;  %s184_s8 = sshll.u32 %s1967_s7, 4  ;;  %s2079_s8 = int_to_ptr.vmem [resolvable:$true] %s184_s8 }
  0x1b   : > { %s1968_s9 = smov [#allocation8]   ;;  %s2632_s1 = sld [smem:[#allocation17_spill]] }
  0x1c   : > { %p2075_p10 = pnand %p1637_p9, %p2045_p1  ;;  %s2081_s10 = sshll.u32 %s1968_s9, 4  ;;  %s196_s10 = int_to_ptr.vmem [resolvable:$true] %s2081_s10 }
  0x1e   : > { %p2091_p12 = pneg %p2075_p10 }
  0x21   : > { %s1744_s13 = scalar_lea.hbm %s2632_s1, 256 }
  0x22   : > { %p1745_p11 = scmp.ne.s32.totalorder %s2632_s1, %s1744_s13  ;;  %p1751_p3 = scmp.lt.u32.totalorder %s1744_s13, %s2632_s1 }
  0x24   : > { %p1747_p13 = pnand %p2091_p12, %p1745_p11 }
  0x26   : > { %p1748_p0 = pneg %p1747_p13 }
  0x28   : > { %p1753_p5 = pnand %p1751_p3, %p1748_p0 }
  0x2a   : > { %1756 = shalt.err (!%p1753_p5)
}
  0x2b   : > { %s1757_s9 = scalar_lea.vmem %s2069_s5, 256  ;;  %p1765_p1 = scmp.lt.s32.totalorder %s2069_s5, %s2069_s5 }
  0x2c   : > { %p1758_p7 = scmp.ne.s32.totalorder %s2069_s5, %s1757_s9  ;;  %p1766_p4 = scmp.lt.s32.totalorder %s1757_s9, %s1757_s9 }
  0x2e   : > { %p1760_p9 = pnand %p1758_p7, %p2091_p12  ;;  %p1767_p11 = por %p1766_p4, %p1765_p1 }
  0x30   : > { %p1761_p6 = pneg %p1760_p9 }
  0x32   : > { %p1768_p13 = pnand %p1767_p11, %p1761_p6 }
  0x34   : > { %1771 = shalt.err (!%p1768_p13)
}
  0x35   : > { %s2619_s11 = smov 64   ;;  %s2620_s12 = smov 4  }
  0x36   : > { %1640 = dma.hbm_to_vmem [thread:$0]  (!%p2075_p10), %s2632_s1, 256, %s2069_s5, [#allocation6], %s2619_s11, %s2619_s11, %s2620_s12  }
  0x37   : > { %s2634_s2 = sld [smem:[#allocation18_spill]] }
  0x3d   : > { %s1772_s7 = scalar_lea.hbm %s2634_s2, 16 }
  0x3e   : > { %p1773_p1 = scmp.ne.s32.totalorder %s2634_s2, %s1772_s7  ;;  %p1779_p0 = scmp.lt.u32.totalorder %s1772_s7, %s2634_s2 }
  0x40   : > { %p1775_p4 = pnand %p1773_p1, %p2091_p12 }
  0x42   : > { %p1776_p6 = pneg %p1775_p4 }
  0x44   : > { %p1781_p3 = pnand %p1779_p0, %p1776_p6 }
  0x46   : > { %1784 = shalt.err (!%p1781_p3)
}
  0x47   : > { %s1785_s5 = scalar_lea.vmem %s2079_s8, 16  ;;  %s1792_s28 = scalar_lea.vmem %s2079_s8, 32 }
  0x48   : > { %p1786_p5 = scmp.ne.s32.totalorder %s2079_s8, %s1785_s5  ;;  %p1793_p11 = scmp.lt.s32.totalorder %s2079_s8, %s2079_s8 }
  0x49   : > { %p1794_p13 = scmp.lt.s32.totalorder %s1792_s28, %s1785_s5 }
  0x4a   : > { %p1788_p7 = pnand %p1786_p5, %p2091_p12 }
  0x4b   : > { %p1795_p1 = por %p1794_p13, %p1793_p11 }
  0x4c   : > { %p1789_p9 = pneg %p1788_p7 }
  0x4e   : > { %p1796_p4 = pnand %p1795_p1, %p1789_p9 }
  0x50   : > { %1799 = shalt.err (!%p1796_p4)
}
  0x51   : > { %1643 = dma.hbm_to_vmem [thread:$0]  (!%p2075_p10), %s2634_s2, 16, %s2079_s8, [#allocation6]  }
  0x52   : > { %s1800_s23 = scalar_lea.hbm %s2610_s3, 16 }
  0x53   : > { %p1801_p6 = scmp.ne.s32.totalorder %s2610_s3, %s1800_s23  ;;  %p1807_p5 = scmp.lt.u32.totalorder %s1800_s23, %s2610_s3 }
  0x55   : > { %p1803_p0 = pnand %p1801_p6, %p2091_p12 }
  0x57   : > { %p1804_p3 = pneg %p1803_p0 }
  0x59   : > { %p1809_p7 = pnand %p1807_p5, %p1804_p3 }
  0x5b   : > { %1812 = shalt.err (!%p1809_p7)
}
  0x5c   : > { %s1813_s28 = scalar_lea.vmem %s196_s10, 16  ;;  %s1820_s8 = scalar_lea.vmem %s196_s10, 32 }
  0x5d   : > { %p1814_p9 = scmp.ne.s32.totalorder %s196_s10, %s1813_s28  ;;  %p1821_p1 = scmp.lt.s32.totalorder %s196_s10, %s196_s10 }
  0x5e   : > { %p1822_p4 = scmp.lt.s32.totalorder %s1820_s8, %s1813_s28 }
  0x5f   : > { %p1816_p11 = pnand %p1814_p9, %p2091_p12 }
  0x60   : > { %p1823_p8 = por %p1822_p4, %p1821_p1 }
  0x61   : > { %p1817_p13 = pneg %p1816_p11 }
  0x63   : > { %p1824_p2 = pnand %p1823_p8, %p1817_p13 }
  0x65   : > { %1827 = shalt.err (!%p1824_p2)
}
  0x66   : > { %1646 = dma.hbm_to_vmem [thread:$0]  (!%p2075_p10), %s2610_s3, 16, %s196_s10, [#allocation9]  }
  0x67   : > { %s31_s24 = sadd.s32 1, %s1956_s20  ;;  %s34_s6 = sadd.s32 1, %s1960_s21 }
  0x68   : > { %p32_p2 = scmp.ge.s32.totalorder %s31_s24, 2  ;;  %s43_s13 = sadd.s32 1, %s1944_s17 }
  0x69   : > { %p50_p8 = scmp.ne.s32.totalorder %s1944_s17, %s1940_s16  ;;  %p51_p12 = scmp.eq.s32.totalorder %s1964_s22, 0 }
  0x6a   : > { %s2657_s24 = smov (%p32_p2, %s31_s24), 0  ;;  %s2659_s6 = smov (!%p32_p2, %s34_s6), %s1960_s21 }
  0x6b   : > { %s39_s14 = ssub.s32 %s1956_s20, %s2657_s24  ;;  %p36_p6 = scmp.ge.s32.totalorder %s2659_s6, 2 }
  0x6c   : > { %p2635_p0 = scmp.ne.s32.totalorder %s2626_s26, 0  ;;  %p52_p10 = por %p51_p12, %p50_p8 }
  0x6d   : > { %p1658_p5 = scmp.lt.s32.totalorder %s1964_s22, 4  ;;  %s2661_s6 = smov (%p36_p6, %s2659_s6), 0 }
  0x6e   : > { %p2171_p3 = por %p2635_p0, %p50_p8  ;;  %s206_s10 = sand.u32 1, %s1944_s17  }
  0x6f   : > { %s1618_s30 = smul.u32 27, %s1956_s20  ;;  %s38_s7 = ssub.s32 %s1960_s21, %s2661_s6 }
  0x70   : > { %s40_s9 = sor.u32 %s39_s14, %s38_s7  ;;  %s1617_s5 = smul.u32 108, %s206_s10 }
  0x71   : > { %p41_p7 = scmp.eq.s32.totalorder %s40_s9, 0  ;;  %s1619_s28 = smul.u32 54, %s1960_s21 }
  0x72   : > { %p2183_p9 = pnand %p1658_p5, %p52_p10  ;;  %s210_s15 = scalar_lea.vmem [#allocation2], %s1617_s5 }
  0x73   : > { %s2188_s26 = scalar_select %p41_p7, %s1944_s17, %s43_s13  }
  0x74   : > { %s216_s4 = sadd.s32 %s1619_s28, %s1618_s30  ;;  %s219_s11 = sshll.u32 %s210_s15, 4  ;;  %s2190_s11 = int_to_ptr.vmem [resolvable:$true] %s219_s11 }
  0x75   : > { %s1375_s12 = sshll.u32 %s216_s4, 6  ;;  %s2197_s7 = scalar_lea.sflag [#allocation3], %s206_s10 }
  0x76   : > { %s2195_s14 = scalar_lea.hbm %s2607_s0, %s1375_s12  ;;  %p1830_p13 = pneg %p2183_p9 }
  0x77   : > { %s1828_s9 = scalar_lea.hbm %s2195_s14, 1728  ;;  %s1833_s1 = scalar_lea.hbm %s2607_s0, 6912 }
  0x78   : > { %p1829_p11 = scmp.ne.s32.totalorder %s2195_s14, %s1828_s9  ;;  %p1834_p2 = scmp.lt.u32.totalorder %s2195_s14, %s2607_s0 }
  0x79   : > { %p1835_p8 = scmp.lt.u32.totalorder %s1833_s1, %s1828_s9  ;;  %p1837_p6 = scmp.lt.u32.totalorder %s1828_s9, %s2195_s14 }
  0x7a   : > { %p1831_p1 = pnand %p1830_p13, %p1829_p11 }
  0x7b   : > { %p1836_p12 = por %p1835_p8, %p1834_p2 }
  0x7c   : > { %p1832_p4 = pneg %p1831_p1 }
  0x7d   : > { %p1838_p0 = por %p1837_p6, %p1836_p12 }
  0x7f   : > { %p1839_p10 = pnand %p1838_p0, %p1832_p4 }
  0x81   : > { %1842 = shalt.err (!%p1839_p10)
}
  0x82   : > { %s1843_s10 = scalar_lea.vmem %s2190_s11, 1728  ;;  %s1971_s5 = smov [#allocation2]  }
  0x83   : > { %p1844_p5 = scmp.ne.s32.totalorder %s2190_s11, %s1843_s10  ;;  %s1848_s28 = sshll.u32 %s1971_s5, 4  ;;  %s1849_s28 = int_to_ptr.vmem [resolvable:$false] %s1848_s28 }
  0x84   : > { %s1850_s4 = scalar_lea.vmem %s1849_s28, 3456  ;;  %p1851_p1 = scmp.lt.s32.totalorder %s2190_s11, %s1849_s28 }
  0x85   : > { %p1846_p7 = pnand %p1844_p5, %p1830_p13  ;;  %p1852_p2 = scmp.lt.s32.totalorder %s1850_s4, %s1843_s10 }
  0x87   : > { %p1847_p11 = pneg %p1846_p7  ;;  %p1853_p8 = por %p1852_p2, %p1851_p1 }
  0x89   : > { %p1854_p12 = pnand %p1853_p8, %p1847_p11 }
  0x8b   : > { %1857 = shalt.err (!%p1854_p12)
}
  0x8c   : > { %s2638_s15 = smov 4   ;;  %s2639_s9 = smov 64  }
  0x8d   : > { %1650 = dma.hbm_to_vmem [thread:$0]  (!%p2183_p9), %s2195_s14, 1728, %s2190_s11, %s2197_s7, %s2639_s9, %s2639_s9, %s2638_s15  }
  0x8e   : > { %p2640_p13 = scmp.ne.s32.totalorder %s2630_s29, 0 }
  0x8f   : > { %s2231_s13 = sand.u32 (!%p2640_p13), 1, %s1940_s16   ;;  %p2641_p4 = scmp.ne.s32.totalorder (!%p2640_p13), %s2627_s27, 0 }
  0x90   : > { %231 = sbr.rel (%p2640_p13) target bundleno = 591 (0x24f), region = 36  ;;  %s234_s1 = scalar_lea.sflag (!%p2640_p13), [#allocation3], %s2231_s13 }
  0x91   : > { %s1620_s30 = smul.u32 (!%p2640_p13), 108, %s2231_s13 }
  0x93   : > { %s2235_s2 = scalar_lea.vmem (!%p2640_p13), [#allocation2], %s1620_s30 }
  0x97   : > { %1919 = dma.done.wait (%p2641_p4), %s234_s1, 1728  }
  0x98   : > { %1921 = vsyncadd (%p2641_p4), %s234_s1, 4294965568  ;;  %p2642_p9 = scmp.ne.s32.totalorder %s2625_s25, 0 }
  0x9a   : > { %1923 = dma.done.wait (%p2642_p9), [#allocation6], 272  }
  0x9b   : > { %1925 = vsyncadd (%p2642_p9), [#allocation6], 4294967024 }
  0x9c   : > { %1927 = dma.done.wait (%p2642_p9), [#allocation9], 16  }
  0x9d   : > { %1929 = vsyncadd (%p2642_p9), [#allocation9], 4294967280  ;;  %vm574_vm0 = vcmask 1043456   ;;  %vm549_vm1 = vcmask 64512   ;;  %vm303_vm2 = vsmask.f32 3328 }
  0x9e   : > { %v840_v0 = vld [vmem:[#allocation5 + $0x8] sm:$0xf]  ;;  %v279_v1 = vld [vmem:[%s2235_s2 + $0xc] sm:$0xf]  ;;  %v280_v2 = vld [vmem:[%s2235_s2 + $0x10] sm:$0xf] }
  0x9f   : > { %1615 = vmatprep.subr.msk.bf16.mxu0 %vm574_vm0, %v840_v0  ;;  %v850_v3 = vsel %vm574_vm0, %v840_v0, 0  ;;  %v331_v4 = vshrl.u32 %v279_v1, 16  ;;  %v334_v5 = vshll.u32 %v279_v1, 16  ;;  %v340_v6 = vshll.u32 %v280_v2, 16  ;;  %v282_v7 = vld [vmem:[%s2235_s2 + $0x18] sm:$0xf] }
  0xa0   : > { %1530 = vmatpush3.bf16.msra.mxu0 %v850_v3  ;;  %v344_v8 = vshrl.u32 %v280_v2, 16  ;;  %v2254_v9 = vcombine.low %v279_v1, %v280_v2  ;;  %v283_v10 = vld [vmem:[%s2235_s2 + $0x1c] sm:$0xf]  ;;  %v355_v11 = vshrl.u32 %v282_v7, 16  ;;  %v358_v12 = vshll.u32 %v282_v7, 16  ;;  %s1380_s25 = sshll.u32 %s2231_s13, 8 }
  0xa1   : > { %v333_v13 = vrot.slane %v331_v4, 4  ;;  %v336_v14 = vrot.slane %v334_v5, 5  ;;  %v2257_v15 = vrot.slane %v340_v6, 5  ;;  %v364_v16 = vshll.u32 %v283_v10, 16  ;;  %v524_v17 = vld [vmem:[#allocation5 + $0x4] sm:$0xf] }
  0xa2   : > { %v346_v18 = vrot.slane %v344_v8, 4  ;;  %1531 = vmatprep.mubr.msk.bf16.mxu0 %vm549_vm1, %v2254_v9  ;;  %v368_v19 = vshrl.u32 %v283_v10, 16  ;;  %1613 = vmatprep.subr.msk.bf16.mxu1 %vm574_vm0, %v524_v17  ;;  %v2263_v20 = vld [vmem:[%s2235_s2] sm:$0xf]  ;;  %vm304_vm3 = vsmask.f32 7440  ;;  %v2267_v23 = vcombine.low %v282_v7, %v283_v10 }
  0xa3   : > { %v337_v21 = vor.u32 %v336_v14, %v333_v13  ;;  %v2265_v22 = vrot.slane %v355_v11, 4  ;;  %v576_v24 = vsel %vm574_vm0, %v524_v17, 0  ;;  %v2271_v25 = vld [vmem:[%s2235_s2 + $0x4] sm:$0xf]  ;;  %v278_v26 = vld [vmem:[%s2235_s2 + $0x8] sm:$0x1]  ;;  %vm2290_vm4 = vmor %vm303_vm2, %vm304_vm3 }
  0xa4   : > { %v347_v27 = vor.u32 %v346_v18, %v2257_v15  ;;  %v2275_v28 = vrot.slane %v358_v12, 5  ;;  %1494 = vmatpush3.bf16.msra.mxu1 %v576_v24  ;;  %v307_v29 = vshrl.u32 %v2263_v20, 16  ;;  %v310_v30 = vshll.u32 %v2263_v20, 16  ;;  %v522_v31 = vld [vmem:[#allocation5] sm:$0xf]  ;;  %1532 = vmatmul.mubr.msk.bf16.vlgmr.msra.gmra.mrb[0].mxu0 %vm549_vm1, %v2267_v23  ;;  %s1972_s27 = smov 120  }
  0xa5   : > { %v2279_v32 = vrot.slane %v364_v16, 5  ;;  %v316_v33 = vshll.u32 %v2271_v25, 16  ;;  %v320_v34 = vshrl.u32 %v2271_v25, 16  ;;  %v326_v35 = vshll.u32 %v278_v26, 16  ;;  %1614 = vmatprep.subr.msk.bf16.mxu1 %vm574_vm0, %v522_v31  ;;  %v285_v36 = vld [vmem:[%s2235_s2 + $0x24] sm:$0xf] }
  0xa6   : > { %v370_v37 = vrot.slane %v368_v19, 4  ;;  %v309_v38 = vrot.slane %v307_v29, 4  ;;  %v312_v39 = vrot.slane %v310_v30, 5  ;;  %v286_v40 = vld [vmem:[%s2235_s2 + $0x28] sm:$0xf]  ;;  %v379_v41 = vshrl.u32 %v285_v36, 16 }
  0xa7   : > { %v338_v42 = vrot.slane %v337_v21, 4  ;;  %v318_v43 = vrot.slane %v316_v33, 5  ;;  %v322_v44 = vrot.slane %v320_v34, 4  ;;  %v382_v45 = vshll.u32 %v285_v36, 16  ;;  %v966_v46 = vld [vmem:[#allocation5 + $0xc] sm:$0xf] }
  0xa8   : > { %v348_v47 = vrot.slane %v347_v27, 4  ;;  %v313_v49 = vor.u32 %v312_v39, %v309_v38  ;;  %v388_v50 = vshll.u32 %v286_v40, 16  ;;  %v392_v51 = vshrl.u32 %v286_v40, 16  ;;  %1616 = vmatprep.subr.msk.bf16.mxu0 %vm574_vm0, %v966_v46  ;;  %v281_v52 = vld [vmem:[%s2235_s2 + $0x14] sm:$0x1]  ;;  %s2438_s29 = scalar_lea.vmem [#allocation10], %s1380_s25 }
  0xa9   : > { %v323_v53 = vor.u32 %v322_v44, %v318_v43  ;;  %v328_v54 = vrot.slane %v326_v35, 5  ;;  %v381_v55 = vrot.slane %v379_v41, 4  ;;  %v2296_v56 = vcombine.low %v285_v36, %v286_v40  ;;  %v288_v59 = vld [vmem:[%s2235_s2 + $0x30] sm:$0xf]  ;;  %v289_v60 = vld [vmem:[%s2235_s2 + $0x34] sm:$0xf] }
  0xaa   : > { %v314_v57 = vrot.slane %v313_v49, 4  ;;  %v350_v58 = vshll.u32 %v281_v52, 16  ;;  %v384_v62 = vrot.slane %v382_v45, 5  ;;  %v2300_v63 = vrot.slane %v388_v50, 5  ;;  %v284_v10 = vld [vmem:[%s2235_s2 + $0x20] sm:$0x1] }
  0xab   : > { %v324_v61 = vrot.slane %v323_v53, 4  ;;  %1535 = vmatprep.mubr.msk.bf16.mxu0 %vm549_vm1, %v2296_v56  ;;  %v343_v0 = vsel %vm2290_vm4, %v338_v42, %v2257_v15  ;;  %v394_v2 = vrot.slane %v392_v51, 4  ;;  %v403_v4 = vshrl.u32 %v288_v59, 16  ;;  %v291_v11 = vld [vmem:[%s2235_s2 + $0x3c] sm:$0xf]  ;;  %s1456_s11 = sshll.u32 %s1948_s18, 5 }
  0xac   : > { %v319_v1 = vsel %vm2290_vm4, %v314_v57, %v318_v43  ;;  %v352_v3 = vrot.slane %v350_v58, 5  ;;  %v740_v6 = vsel %vm574_vm0, %v522_v31, 0  ;;  %v406_v7 = vshll.u32 %v288_v59, 16  ;;  %v292_v16 = vld [vmem:[%s2235_s2 + $0x40] sm:$0xf]  ;;  %s1452_s8 = sshll.u32 %s1952_s19, 6 }
  0xad   : > { %v329_v5 = vsel %vm2290_vm4, %v324_v61, %v328_v54  ;;  %v2312_v8 = vcombine.low %v288_v59, %v289_v60  ;;  %v412_v14 = vshll.u32 %v289_v60, 16  ;;  %v416_v15 = vshrl.u32 %v289_v60, 16  ;;  %v287_v35 = vld [vmem:[%s2235_s2 + $0x2c] sm:$0x1]  ;;  %v294_v42 = vld [vmem:[%s2235_s2 + $0x48] sm:$0xf]  ;;  %s1246_s14 = sadd.s32 %s1456_s11, %s1452_s8 }
  0xae   : > { %v1381_v12 = vcombine.low %v319_v1, %v329_v5  ;;  %v353_v13 = vsel %vm2290_vm4, %v348_v47, %v352_v3  ;;  %v974_v18 = vsel %vm574_vm0, %v966_v46, 0  ;;  %v361_v19 = vor.u32 %v2275_v28, %v2265_v22  ;;  %v295_v47 = vld [vmem:[%s2235_s2 + $0x4c] sm:$0xf]  ;;  %v290_v52 = vld [vmem:[%s2235_s2 + $0x38] sm:$0x1]  ;;  %s1453_s7 = sshll.u32 %s1246_s14, 7 }
  0xaf   : > { %v2319_v17 = vcombine.low %v343_v0, %v353_v13  ;;  %1536 = vmatmul.mubr.msk.bf16.gmra.mrb[4].mxu0 %vm549_vm1, %v2312_v8  ;;  %v371_v21 = vor.u32 %v370_v37, %v2279_v32  ;;  %v405_v24 = vrot.slane %v403_v4, 4  ;;  %v374_v26 = vshll.u32 %v284_v10, 16  ;;  %v297_v58 = vld [vmem:[%s2235_s2 + $0x54] sm:$0xf]  ;;  %v298_v0 = vld [vmem:[%s2235_s2 + $0x58] sm:$0xf] }
  0xb0   : > { %1495 = vmatprep.mubr.msk.bf16.mxu1 %vm549_vm1, %v1381_v12  ;;  %1548 = vmatpush3.bf16.msra.mxu0 %v974_v18  ;;  %v427_v27 = vshrl.u32 %v291_v11, 16  ;;  %v430_v29 = vshll.u32 %v291_v11, 16  ;;  %v362_v30 = vrot.slane %v361_v19, 4  ;;  %v436_v33 = vshll.u32 %v292_v16, 16  ;;  %s1249_s12 = sshll.u32 %s2438_s29, 4  ;;  %s2645_s10 = sld [smem:[#allocation19_spill]]  ;;  %s2549_s12 = int_to_ptr.vmem [resolvable:$true] %s1249_s12 }
  0xb1   : > { %1496 = vmatmul.mubr.msk.bf16.vlgmr.msra.gmra.mrb[0].mxu1 %vm549_vm1, %v2319_v17  ;;  %v372_v31 = vrot.slane %v371_v21, 4  ;;  %v2330_v34 = vcombine.low %v291_v11, %v292_v16  ;;  %v408_v22 = vrot.slane %v406_v7, 5  ;;  %v414_v28 = vrot.slane %v412_v14, 5  ;;  %v293_v14 = vld [vmem:[%s2235_s2 + $0x44] sm:$0x1]  ;;  %s1233_s28 = scalar_lea.sflag [#allocation4], %s2231_s13 }
  0xb2   : > { %1512 = vmatpush3.bf16.msra.mxu1 %v740_v6  ;;  %v376_v36 = vrot.slane %v374_v26, 5  ;;  %v440_v37 = vshrl.u32 %v292_v16, 16  ;;  %v418_v38 = vrot.slane %v416_v15, 4  ;;  %v367_v39 = vsel %vm2290_vm4, %v362_v30, %v2279_v32  ;;  %v301_v30 = vld [vmem:[%s2235_s2 + $0x64] sm:$0xf]  ;;  %s1858_s4 = scalar_lea.vmem %s2549_s12, 4096 }
  0xb3   : > { %1539 = vmatprep.mubr.msk.bf16.mxu0 %vm549_vm1, %v2330_v34  ;;  %v385_v40 = vor.u32 %v384_v62, %v381_v55  ;;  %v395_v41 = vor.u32 %v394_v2, %v2300_v63  ;;  %v429_v44 = vrot.slane %v427_v27, 4  ;;  %v432_v45 = vrot.slane %v430_v29, 5  ;;  %v300_v29 = vld [vmem:[%s2235_s2 + $0x60] sm:$0xf]  ;;  %p1859_p6 = scmp.ne.s32.totalorder %s2549_s12, %s1858_s4  ;;  %s1973_s15 = smov [#allocation10]  }
  0xb4   : > { %v377_v43 = vsel %vm2290_vm4, %v372_v31, %v376_v36  ;;  %v398_v46 = vshll.u32 %v287_v35, 16  ;;  %v438_v50 = vrot.slane %v436_v33, 5  ;;  %v442_v53 = vrot.slane %v440_v37, 4  ;;  %s1862_s9 = sshll.u32 %s1973_s15, 4  ;;  %s1863_s9 = int_to_ptr.vmem [resolvable:$false] %s1862_s9 }
  0xb5   : > { %v2343_v49 = vcombine.low %v367_v39, %v377_v43  ;;  %v386_v32 = vrot.slane %v385_v40, 4  ;;  %v396_v51 = vrot.slane %v395_v41, 4  ;;  %v451_v55 = vshrl.u32 %v294_v42, 16  ;;  %v296_v39 = vld [vmem:[%s2235_s2 + $0x50] sm:$0x1]  ;;  %p1860_p0 = pnand %p1859_p6, %p2171_p3  ;;  %s1864_s30 = scalar_lea.vmem %s1863_s9, 8192 }
  0xb6   : > { %v400_v54 = vrot.slane %v398_v46, 5  ;;  %v454_v57 = vshll.u32 %v294_v42, 16  ;;  %v460_v60 = vshll.u32 %v295_v47, 16  ;;  %v2352_v61 = vcombine.low %v294_v42, %v295_v47  ;;  %v299_v43 = vld [vmem:[%s2235_s2 + $0x5c] sm:$0x1]  ;;  %s2547_s5 = scalar_lea.hbm %s2645_s10, %s1453_s7  ;;  %p1865_p5 = scmp.lt.s32.totalorder %s2549_s12, %s1863_s9 }
  0xb7   : > { %1499 = vmatprep.mubr.msk.bf16.mxu1 %vm549_vm1, %v2343_v49  ;;  %v391_v59 = vsel %vm2290_vm4, %v386_v32, %v2300_v63  ;;  %v409_v62 = vor.u32 %v408_v22, %v405_v24  ;;  %v464_v2 = vshrl.u32 %v295_v47, 16  ;;  %v419_v3 = vor.u32 %v418_v38, %v414_v28  ;;  %p1861_p10 = pneg %p1860_p0  ;;  %p1866_p7 = scmp.lt.s32.totalorder %s1864_s30, %s1858_s4 }
  0xb8   : > { %v401_v1 = vsel %vm2290_vm4, %v396_v51, %v400_v54  ;;  %v422_v4 = vshll.u32 %v290_v52, 16  ;;  %1540 = vmatmul.mubr.msk.bf16.gmra.mrb[8].mxu0 %vm549_vm1, %v2352_v61  ;;  %v475_v7 = vshrl.u32 %v297_v58, 16  ;;  %v478_v63 = vshll.u32 %v297_v58, 16 }
  0xb9   : > { %v2357_v5 = vcombine.low %v391_v59, %v401_v1  ;;  %v410_v6 = vrot.slane %v409_v62, 4  ;;  %v420_v10 = vrot.slane %v419_v3, 4  ;;  %v484_v12 = vshll.u32 %v298_v0, 16  ;;  %p1867_p11 = por %p1866_p7, %p1865_p5 }
  0xba   : > { %v424_v11 = vrot.slane %v422_v4, 5  ;;  %v488_v13 = vshrl.u32 %v298_v0, 16  ;;  %v453_v15 = vrot.slane %v451_v55, 4  ;;  %v456_v16 = vrot.slane %v454_v57, 5 }
  0xbb   : > { %1500 = vmatmul.mubr.msk.bf16.gmra.mrb[4].mxu1 %vm549_vm1, %v2357_v5  ;;  %v415_v18 = vsel %vm2290_vm4, %v410_v6, %v414_v28  ;;  %v2366_v19 = vcombine.low %v297_v58, %v298_v0  ;;  %v462_v21 = vrot.slane %v460_v60, 5  ;;  %v466_v24 = vrot.slane %v464_v2, 4  ;;  %p1868_p1 = pnand %p1867_p11, %p1861_p10 }
  0xbc   : > { %v425_v26 = vsel %vm2290_vm4, %v420_v10, %v424_v11  ;;  %v433_v27 = vor.u32 %v432_v45, %v429_v44  ;;  %v477_v33 = vrot.slane %v475_v7, 4  ;;  %v443_v35 = vor.u32 %v442_v53, %v438_v50 }
  0xbd   : > { %v1385_v31 = vcombine.low %v415_v18, %v425_v26  ;;  %1543 = vmatprep.mubr.msk.bf16.mxu0 %vm549_vm1, %v2366_v19  ;;  %v446_v22 = vshll.u32 %v293_v14, 16  ;;  %v480_v28 = vrot.slane %v478_v63, 5  ;;  %v486_v36 = vrot.slane %v484_v12, 5 }
  0xbe   : > { %v490_v37 = vrot.slane %v488_v13, 4  ;;  %v434_v38 = vrot.slane %v433_v27, 4  ;;  %v444_v40 = vrot.slane %v443_v35, 4  ;;  %v1413_v42 = vcombine.low %v300_v29, %v301_v30 }
  0xbf   : > { %1503 = vmatprep.mubr.msk.bf16.mxu1 %vm549_vm1, %v1385_v31  ;;  %v448_v41 = vrot.slane %v446_v22, 5  ;;  %v457_v46 = vor.u32 %v456_v16, %v453_v15  ;;  %v467_v47 = vor.u32 %v466_v24, %v462_v21  ;;  %v470_v32 = vshll.u32 %v296_v39, 16  ;;  %v302_v15 = vld [vmem:[%s2235_s2 + $0x68] sm:$0x1] }
  0xc0   : > { %v439_v44 = vsel %vm2290_vm4, %v434_v38, %v438_v50  ;;  %1544 = vmatmul.mubr.msk.bf16.gmra.mrb[12].mxu0 %vm549_vm1, %v1413_v42  ;;  %v481_v52 = vor.u32 %v480_v28, %v477_v33  ;;  %v491_v53 = vor.u32 %v490_v37, %v486_v36  ;;  %v494_v54 = vshll.u32 %v299_v43, 16 }
  0xc1   : > { %v449_v45 = vsel %vm2290_vm4, %v444_v40, %v448_v41  ;;  %1549 = vmatprep.mubr.msk.bf16.mxu0 %vm549_vm1, %v2319_v17  ;;  %v458_v55 = vrot.slane %v457_v46, 4  ;;  %v468_v57 = vrot.slane %v467_v47, 4  ;;  %v472_v58 = vrot.slane %v470_v32, 5 }
  0xc2   : > { %v1386_v51 = vcombine.low %v439_v44, %v449_v45  ;;  %v482_v50 = vrot.slane %v481_v52, 4  ;;  %v492_v59 = vrot.slane %v491_v53, 4  ;;  %v496_v60 = vrot.slane %v494_v54, 5 }
  0xc3   : > { %v463_v62 = vsel %vm2290_vm4, %v458_v55, %v462_v21  ;;  %v473_v0 = vsel %vm2290_vm4, %v468_v57, %v472_v58  ;;  %v1397_v4 = vcombine.low %v2263_v20, %v2271_v25  ;;  %v499_v6 = vshrl.u32 %v300_v29, 16 }
  0xc4   : > { %1504 = vmatmul.mubr.msk.bf16.gmra.mrb[8].mxu1 %vm549_vm1, %v1386_v51  ;;  %v1387_v1 = vcombine.low %v463_v62, %v473_v0  ;;  %v487_v17 = vsel %vm2290_vm4, %v482_v50, %v486_v36  ;;  %v497_v2 = vsel %vm2290_vm4, %v492_v59, %v496_v60  ;;  %v502_v7 = vshll.u32 %v300_v29, 16 }
  0xc5   : > { %v1388_v3 = vcombine.low %v487_v17, %v497_v2  ;;  %v508_v63 = vshll.u32 %v301_v30, 16  ;;  %v512_v10 = vshrl.u32 %v301_v30, 16  ;;  %v501_v11 = vrot.slane %v499_v6, 4 }
  0xc6   : > { %1507 = vmatprep.mubr.msk.bf16.mxu1 %vm549_vm1, %v1387_v1  ;;  %v504_v12 = vrot.slane %v502_v7, 5 }
  0xc7   : > { %v510_v13 = vrot.slane %v508_v63, 5  ;;  %v514_v14 = vrot.slane %v512_v10, 4 }
  0xc8   : > { %1550 = vmatmul.mubr.msk.bf16.vlgmr.msra.gmra.mrb[0].mxu0 %vm549_vm1, %v2343_v49  ;;  %v505_v20 = vor.u32 %v504_v12, %v501_v11  ;;  %v518_v49 = vshll.u32 %v302_v15, 16 }
  0xc9   : > { %1553 = vmatprep.mubr.msk.bf16.mxu0 %vm549_vm1, %v2357_v5  ;;  %v515_v25 = vor.u32 %v514_v14, %v510_v13 }
  0xca   : > { %v506_v5 = vrot.slane %v505_v20, 4  ;;  %v520_v18 = vrot.slane %v518_v49, 5 }
  0xcb   : > { %v516_v16 = vrot.slane %v515_v25, 4 }
  0xcc   : > { %1508 = vmatmul.mubr.msk.bf16.gmra.mrb[12].mxu1 %vm549_vm1, %v1388_v3  ;;  %v511_v21 = vsel %vm2290_vm4, %v506_v5, %v510_v13 }
  0xcd   : > { %1513 = vmatprep.mubr.msk.bf16.mxu1 %vm549_vm1, %v1397_v4  ;;  %v521_v24 = vsel %vm2290_vm4, %v516_v16, %v520_v18 }
  0xd0   : > { %1554 = vmatmul.mubr.msk.bf16.gmra.mrb[4].mxu0 %vm549_vm1, %v1385_v31  ;;  %v2426_v31 = vld [vmem:[#allocation7] ss:$0 sm:$0xff] }
  0xd1   : > { %1557 = vmatprep.mubr.msk.bf16.mxu0 %vm549_vm1, %v1386_v51 }
  0xd4   : > { %1514 = vmatmul.mubr.msk.bf16.vlgmr.msra.gmra.mrb[0].mxu1 %vm549_vm1, %v2254_v9  ;;  %v1422_v9 = vcombine.low %v511_v21, %v521_v24 }
  0xd5   : > { %1517 = vmatprep.mubr.msk.bf16.mxu1 %vm549_vm1, %v2267_v23 }
  0xd8   : > { %1558 = vmatmul.mubr.msk.bf16.gmra.mrb[8].mxu0 %vm549_vm1, %v1387_v1 }
  0xd9   : > { %1561 = vmatprep.mubr.msk.bf16.mxu0 %vm549_vm1, %v1388_v3 }
  0xdc   : > { %1518 = vmatmul.mubr.msk.bf16.gmra.mrb[4].mxu1 %vm549_vm1, %v2296_v56 }
  0xdd   : > { %1521 = vmatprep.mubr.msk.bf16.mxu1 %vm549_vm1, %v2312_v8 }
  0xe0   : > { %1562 = vmatmul.mubr.msk.bf16.gmra.mrb[12].mxu0 %vm549_vm1, %v1422_v9 }
  0xe4   : > { %1522 = vmatmul.mubr.msk.bf16.gmra.mrb[8].mxu1 %vm549_vm1, %v2330_v34 }
  0xe5   : > { %1525 = vmatprep.mubr.msk.bf16.mxu1 %vm549_vm1, %v2352_v61  ;;  %v2429_v61 = vld [vmem:[#allocation8] ss:$0 sm:$0xff] }
  0xec   : > { %1526 = vmatmul.mubr.msk.bf16.gmra.mrb[12].mxu1 %vm549_vm1, %v2366_v19 }
 0x19b   : > { %v1551_v23 = vpop.f32.mrb[0].mxu0 }
 0x19c   : > { %v1010_v48 = vpop.f32.mrb[1].mxu0 }
 0x19d   : > { %v1552_v26 = vpop.f32.mrb[2].mxu0 }
 0x19e   : > { %v1013_v56 = vpop.f32.mrb[3].mxu0 }
 0x1a3   : > { %v1555_v27 = vpop.f32.mrb[4].mxu0 }
 0x1a4   : > { %v1026_v29 = vpop.f32.mrb[5].mxu0 }
 0x1a5   : > { %v1556_v8 = vpop.f32.mrb[6].mxu0 }
 0x1a6   : > { %v1029_v33 = vpop.f32.mrb[7].mxu0 }
 0x1a7   : > { %v1515_v30 = vpop.f32.mrb[0].mxu1 }
 0x1a8   : > { %v1565_v35 = vadd.f32 %v1551_v23, %v1515_v30  ;;  %v776_v22 = vpop.f32.mrb[1].mxu1 }
 0x1a9   : > { %v1566_v34 = vadd.f32 %v1010_v48, %v776_v22  ;;  %v1516_v28 = vpop.f32.mrb[2].mxu1 }
 0x1aa   : > { %v1099_v19 = vmul.f32 %v1565_v35, %v2426_v31  ;;  %v1567_v36 = vadd.f32 %v1552_v26, %v1516_v28  ;;  %v779_v37 = vpop.f32.mrb[3].mxu1 }
 0x1ab   : > { %v1097_v38 = vmul.f32 %v1566_v34, %v2426_v31  ;;  %v1568_v39 = vadd.f32 %v1013_v56, %v779_v37  ;;  %v1559_v42 = vpop.f32.mrb[8].mxu0 }
 0x1ac   : > { %v1100_v40 = vmul.f32 %v1567_v36, %v2426_v31  ;;  %v1121_v41 = vadd.f32 %v2429_v61, %v1099_v19  ;;  %v1042_v45 = vpop.f32.mrb[9].mxu0 }
 0x1ad   : > { %v1098_v43 = vmul.f32 %v1568_v39, %v2426_v31  ;;  %v1119_v44 = vadd.f32 %v2429_v61, %v1097_v38  ;;  %v1560_v46 = vpop.f32.mrb[10].mxu0 }
 0x1ae   : > { %1171 = vrot.lane.b32.xlu1 %v1121_v41, %s1972_s27  ;;  %1137 = vst.msk [vmem:[%s2438_s29 + $0x20] sm:$0xff] %vm549_vm1, %v1121_v41  ;;  %v1122_v47 = vadd.f32 %v2429_v61, %v1100_v40  ;;  %v1045_v51 = vpop.f32.mrb[11].mxu0 }
 0x1af   : > { %1167 = vrot.lane.b32.xlu0 %v1119_v44, %s1972_s27  ;;  %1135 = vst.msk [vmem:[%s2438_s29] sm:$0xff] %vm549_vm1, %v1119_v44  ;;  %v1519_v32 = vpop.f32.mrb[4].mxu1  ;;  %v1120_v52 = vadd.f32 %v2429_v61, %v1098_v43 }
 0x1b0   : > { %v1569_v53 = vadd.f32 %v1555_v27, %v1519_v32  ;;  %v792_v54 = vpop.f32.mrb[5].mxu1  ;;  %1138 = vst.msk [vmem:[%s2438_s29 + $0x28] sm:$0xff] %vm549_vm1, %v1122_v47 }
 0x1b1   : > { %v1570_v55 = vadd.f32 %v1026_v29, %v792_v54  ;;  %v1520_v57 = vpop.f32.mrb[6].mxu1  ;;  %1136 = vst.msk [vmem:[%s2438_s29 + $0x8] sm:$0xff] %vm549_vm1, %v1120_v52 }
 0x1b2   : > { %v1103_v58 = vmul.f32 %v1569_v53, %v2426_v31  ;;  %v1571_v50 = vadd.f32 %v1556_v8, %v1520_v57  ;;  %1173 = vrot.lane.b32.xlu1 %v1122_v47, %s1972_s27  ;;  %v795_v59 = vpop.f32.mrb[7].mxu1 }
 0x1b3   : > { %v1101_v60 = vmul.f32 %v1570_v55, %v2426_v31  ;;  %v1572_v62 = vadd.f32 %v1029_v33, %v795_v59  ;;  %1169 = vrot.lane.b32.xlu0 %v1120_v52, %s1972_s27  ;;  %v1563_v1 = vpop.f32.mrb[12].mxu0 }
 0x1b4   : > { %v1104_v0 = vmul.f32 %v1571_v50, %v2426_v31  ;;  %v1125_v17 = vadd.f32 %v2429_v61, %v1103_v58  ;;  %v1058_v3 = vpop.f32.mrb[13].mxu0 }
 0x1b5   : > { %v1102_v2 = vmul.f32 %v1572_v62, %v2426_v31  ;;  %v1123_v4 = vadd.f32 %v2429_v61, %v1101_v60  ;;  %v1564_v7 = vpop.f32.mrb[14].mxu0 }
 0x1b6   : > { %1141 = vst.msk [vmem:[%s2438_s29 + $0x60] sm:$0xff] %vm549_vm1, %v1125_v17  ;;  %v1126_v6 = vadd.f32 %v2429_v61, %v1104_v0  ;;  %v1061_v10 = vpop.f32.mrb[15].mxu0 }
 0x1b7   : > { %1179 = vrot.lane.b32.xlu0 %v1125_v17, %s1972_s27  ;;  %v1523_v63 = vpop.f32.mrb[8].mxu1  ;;  %1139 = vst.msk [vmem:[%s2438_s29 + $0x40] sm:$0xff] %vm549_vm1, %v1123_v4  ;;  %v1124_v11 = vadd.f32 %v2429_v61, %v1102_v2 }
 0x1b8   : > { %v1573_v12 = vadd.f32 %v1559_v42, %v1523_v63  ;;  %1181 = vrot.lane.b32.xlu1 %v1126_v6, %s1972_s27  ;;  %1142 = vst.msk [vmem:[%s2438_s29 + $0x68] sm:$0xff] %vm549_vm1, %v1126_v6  ;;  %v808_v13 = vpop.f32.mrb[9].mxu1 }
 0x1b9   : > { %v1574_v14 = vadd.f32 %v1042_v45, %v808_v13  ;;  %v1524_v15 = vpop.f32.mrb[10].mxu1  ;;  %1140 = vst.msk [vmem:[%s2438_s29 + $0x48] sm:$0xff] %vm549_vm1, %v1124_v11 }
 0x1ba   : > { %v1107_v20 = vmul.f32 %v1573_v12, %v2426_v31  ;;  %v1575_v25 = vadd.f32 %v1560_v46, %v1524_v15  ;;  %v811_v49 = vpop.f32.mrb[11].mxu1 }
 0x1bb   : > { %v1105_v5 = vmul.f32 %v1574_v14, %v2426_v31  ;;  %v1576_v16 = vadd.f32 %v1045_v51, %v811_v49  ;;  %1175 = vrot.lane.b32.xlu0 %v1123_v4, %s1972_s27 }
 0x1bc   : > { %v1108_v18 = vmul.f32 %v1575_v25, %v2426_v31  ;;  %1177 = vrot.lane.b32.xlu1 %v1124_v11, %s1972_s27  ;;  %v1129_v21 = vadd.f32 %v2429_v61, %v1107_v20 }
 0x1bd   : > { %v1106_v24 = vmul.f32 %v1576_v16, %v2426_v31  ;;  %v1127_v9 = vadd.f32 %v2429_v61, %v1105_v5 }
 0x1be   : > { %1145 = vst.msk [vmem:[%s2438_s29 + $0xa0] sm:$0xff] %vm549_vm1, %v1129_v21  ;;  %v1130_v23 = vadd.f32 %v2429_v61, %v1108_v18 }
 0x1bf   : > { %1187 = vrot.lane.b32.xlu0 %v1129_v21, %s1972_s27  ;;  %v1527_v48 = vpop.f32.mrb[12].mxu1  ;;  %1143 = vst.msk [vmem:[%s2438_s29 + $0x80] sm:$0xff] %vm549_vm1, %v1127_v9  ;;  %v1128_v26 = vadd.f32 %v2429_v61, %v1106_v24 }
 0x1c0   : > { %v1577_v56 = vadd.f32 %v1563_v1, %v1527_v48  ;;  %1189 = vrot.lane.b32.xlu1 %v1130_v23, %s1972_s27  ;;  %1146 = vst.msk [vmem:[%s2438_s29 + $0xa8] sm:$0xff] %vm549_vm1, %v1130_v23  ;;  %v824_v27 = vpop.f32.mrb[13].mxu1 }
 0x1c1   : > { %v1578_v29 = vadd.f32 %v1058_v3, %v824_v27  ;;  %v1528_v8 = vpop.f32.mrb[14].mxu1  ;;  %1144 = vst.msk [vmem:[%s2438_s29 + $0x88] sm:$0xff] %vm549_vm1, %v1128_v26 }
 0x1c2   : > { %v1111_v30 = vmul.f32 %v1577_v56, %v2426_v31  ;;  %v1579_v33 = vadd.f32 %v1564_v7, %v1528_v8  ;;  %v827_v35 = vpop.f32.mrb[15].mxu1 }
 0x1c3   : > { %v1109_v22 = vmul.f32 %v1578_v29, %v2426_v31  ;;  %v1580_v34 = vadd.f32 %v1061_v10, %v827_v35  ;;  %1183 = vrot.lane.b32.xlu0 %v1127_v9, %s1972_s27 }
 0x1c4   : > { %v1112_v28 = vmul.f32 %v1579_v33, %v2426_v31  ;;  %1185 = vrot.lane.b32.xlu1 %v1128_v26, %s1972_s27  ;;  %v1133_v19 = vadd.f32 %v2429_v61, %v1111_v30 }
 0x1c5   : > { %v1110_v36 = vmul.f32 %v1580_v34, %v2426_v31  ;;  %v1131_v37 = vadd.f32 %v2429_v61, %v1109_v22 }
 0x1c6   : > { %1149 = vst.msk [vmem:[%s2438_s29 + $0xe0] sm:$0xff] %vm549_vm1, %v1133_v19  ;;  %v1134_v38 = vadd.f32 %v2429_v61, %v1112_v28 }
 0x1c7   : > { %1191 = vrot.lane.b32.xlu0 %v1131_v37, %s1972_s27  ;;  %1147 = vst.msk [vmem:[%s2438_s29 + $0xc0] sm:$0xff] %vm549_vm1, %v1131_v37  ;;  %v1132_v39 = vadd.f32 %v2429_v61, %v1110_v36 }
 0x1c8   : > { %1150 = vst.msk [vmem:[%s2438_s29 + $0xe8] sm:$0xff] %vm549_vm1, %v1134_v38 }
 0x1c9   : > { %1193 = vrot.lane.b32.xlu1 %v1132_v39, %s1972_s27  ;;  %1148 = vst.msk [vmem:[%s2438_s29 + $0xc8] sm:$0xff] %vm549_vm1, %v1132_v39 }
 0x1cb   : > { %1195 = vrot.lane.b32.xlu0 %v1133_v19, %s1972_s27 }
 0x1cd   : > { %1197 = vrot.lane.b32.xlu1 %v1134_v38, %s1972_s27 }
 0x220   : > { %v1172_v31 = vpop.permute.xlu1 %1171 }
 0x221   : > { %1435 = vst.msk [vmem:[%s2438_s29 + $0x30] sm:$0xff] %vm549_vm1, %v1172_v31  ;;  %v1168_v40 = vpop.permute.xlu0 %1167 }
 0x222   : > { %1433 = vst.msk [vmem:[%s2438_s29 + $0x10] sm:$0xff] %vm549_vm1, %v1168_v40 }
 0x224   : > { %v1174_v61 = vpop.permute.xlu1 %1173 }
 0x225   : > { %1436 = vst.msk [vmem:[%s2438_s29 + $0x38] sm:$0xff] %vm549_vm1, %v1174_v61  ;;  %v1170_v41 = vpop.permute.xlu0 %1169 }
 0x226   : > { %1434 = vst.msk [vmem:[%s2438_s29 + $0x18] sm:$0xff] %vm549_vm1, %v1170_v41 }
 0x229   : > { %v1180_v42 = vpop.permute.xlu0 %1179 }
 0x22a   : > { %1439 = vst.msk [vmem:[%s2438_s29 + $0x70] sm:$0xff] %vm549_vm1, %v1180_v42  ;;  %v1182_v43 = vpop.permute.xlu1 %1181 }
 0x22b   : > { %1440 = vst.msk [vmem:[%s2438_s29 + $0x78] sm:$0xff] %vm549_vm1, %v1182_v43 }
 0x22d   : > { %v1176_v44 = vpop.permute.xlu0 %1175 }
 0x22e   : > { %1437 = vst.msk [vmem:[%s2438_s29 + $0x50] sm:$0xff] %vm549_vm1, %v1176_v44  ;;  %v1178_v45 = vpop.permute.xlu1 %1177 }
 0x22f   : > { %1438 = vst.msk [vmem:[%s2438_s29 + $0x58] sm:$0xff] %vm549_vm1, %v1178_v45 }
 0x231   : > { %v1188_v46 = vpop.permute.xlu0 %1187 }
 0x232   : > { %1443 = vst.msk [vmem:[%s2438_s29 + $0xb0] sm:$0xff] %vm549_vm1, %v1188_v46  ;;  %v1190_v47 = vpop.permute.xlu1 %1189 }
 0x233   : > { %1444 = vst.msk [vmem:[%s2438_s29 + $0xb8] sm:$0xff] %vm549_vm1, %v1190_v47 }
 0x235   : > { %v1184_v32 = vpop.permute.xlu0 %1183 }
 0x236   : > { %1441 = vst.msk [vmem:[%s2438_s29 + $0x90] sm:$0xff] %vm549_vm1, %v1184_v32  ;;  %v1186_v51 = vpop.permute.xlu1 %1185 }
 0x237   : > { %1442 = vst.msk [vmem:[%s2438_s29 + $0x98] sm:$0xff] %vm549_vm1, %v1186_v51 }
 0x239   : > { %v1192_v52 = vpop.permute.xlu0 %1191 }
 0x23a   : > { %1445 = vst.msk [vmem:[%s2438_s29 + $0xd0] sm:$0xff] %vm549_vm1, %v1192_v52 }
 0x23b   : > { %v1194_v53 = vpop.permute.xlu1 %1193 }
 0x23c   : > { %1446 = vst.msk [vmem:[%s2438_s29 + $0xd8] sm:$0xff] %vm549_vm1, %v1194_v53 }
 0x23d   : > { %v1196_v54 = vpop.permute.xlu0 %1195 }
 0x23e   : > { %1447 = vst.msk [vmem:[%s2438_s29 + $0xf0] sm:$0xff] %vm549_vm1, %v1196_v54 }
 0x23f   : > { %v1198_v55 = vpop.permute.xlu1 %1197 }
 0x240   : > { %1448 = vst.msk [vmem:[%s2438_s29 + $0xf8] sm:$0xff] %vm549_vm1, %v1198_v55 }
 0x241   : > { %1871 = shalt.err (!%p1868_p1)
}
 0x242   : > { %s1872_s1 = scalar_lea.hbm %s2547_s5, 4096  ;;  %s1876_s27 = scalar_lea.hbm %s2645_s10, 16384 }
 0x243   : > { %p1873_p2 = scmp.ne.s32.totalorder %s2547_s5, %s1872_s1  ;;  %p1877_p13 = scmp.lt.u32.totalorder %s2547_s5, %s2645_s10 }
 0x244   : > { %p1878_p4 = scmp.lt.u32.totalorder %s1876_s27, %s1872_s1  ;;  %p1880_p6 = scmp.lt.u32.totalorder %s1872_s1, %s2547_s5 }
 0x245   : > { %p1874_p8 = pnand %p1873_p2, %p2171_p3 }
 0x246   : > { %p1879_p9 = por %p1878_p4, %p1877_p13 }
 0x247   : > { %p1875_p12 = pneg %p1874_p8 }
 0x248   : > { %p1881_p0 = por %p1880_p6, %p1879_p9 }
 0x24a   : > { %p1882_p10 = pnand %p1881_p0, %p1875_p12 }
 0x24c   : > { %1885 = shalt.err (!%p1882_p10)
}
 0x24d   : > { %s1974_s8 = smov 128   ;;  %s1975_s14 = smov 8  }
 0x24e   : > { %1635 = dma.vmem_to_hbm [thread:$0]  (%p2171_p3), %s2549_s12, 4096, %s2547_s5, %s1233_s28, %s1974_s8, %s1974_s8, %s1975_s14  }
 0x24f PF: > { %s2646_s7 = sld [smem:[#allocation15_spill]]  ;;  %s2647_s18 = sld [smem:[#allocation16_spill]] }
 0x250   : > { %p1662_p5 = scmp.ge.s32.totalorder %s1964_s22, 2 }
 0x255   : > { %s1264_s19 = sand.u32 1, %s2646_s7   ;;  %p2648_p7 = scmp.ne.s32.totalorder %s2647_s18, 0 }
 0x256   : > { %s1265_s4 = scalar_lea.sflag [#allocation4], %s1264_s19 }
 0x257   : > { %p1652_p11 = pnand %p1662_p5, %p2648_p7 }
 0x259   : > { %1931 = dma.done.wait (!%p1652_p11), %s1265_s4, 4096  }
 0x25a   : > { %1933 = vsyncadd (!%p1652_p11), %s1265_s4, 4294963200  ;;  %s22_s22 = sadd.s32 1, %s1964_s22   ;;  %s2649_s15 = smov %s1940_s16 }
 0x25b   : > { %p19_p1 = scmp.ge.s32.totalorder %s22_s22, 6   ;;  %s2650_s16 = smov %s1944_s17 }
 0x25c   : > { %s2651_s17 = smov %s2188_s26  ;;  %s2652_s18 = smov %s1956_s20 }
 0x25d   : > { %s2653_s19 = smov %s1960_s21  ;;  %s2654_s20 = smov %s2657_s24 }
 0x25e   : > { %s2655_s21 = smov %s2661_s6  ;;  %21 = sbr.rel (!%p19_p1) target bundleno = 13 (0xd), region = 97 }
 0x265   :  { %1270 = vsyncpa [#allocation3], 1 }
 0x266   :  { %1272 = vsyncpa [#allocation3 + $0x1], 1 }
 0x267   :  { %1273 = vsyncpa [#allocation6], 1 }
 0x268   :  { %1274 = vsyncpa [#allocation9], 1 }
 0x269   :  { %1275 = vsyncpa [#allocation4], 1 }
 0x26a   :  { %1277 = vsyncpa [#allocation4 + $0x1], 1 }

</bundles_post_ra>
